<compile_context>
chip_gen: v6e
topology: v6e:2x2x1
jax: 0.10.0
libtpu: 0.0.40
codegen_flags: <defaults>
</compile_context>

<pallas_src>
import functools
import math

import jax
import jax.numpy as jnp
import numpy as np
from jax.experimental import pallas as pl
from jax.experimental.pallas import tpu as pltpu


# ----------------------------- small helpers --------------------------------

def _layernorm(x, eps=1e-6):
    # torch.nn.LayerNorm(elementwise_affine=False): biased variance over last dim.
    mean = jnp.mean(x, axis=-1, keepdims=True)
    var = jnp.mean((x - mean) ** 2, axis=-1, keepdims=True)
    return (x - mean) / jnp.sqrt(var + eps)


def _gelu_tanh(x):
    # nn.GELU(approximate='tanh')
    c = math.sqrt(2.0 / math.pi)
    return 0.5 * x * (1.0 + jnp.tanh(c * (x + 0.044715 * x * x * x)))


def _round_up(v, m):
    return ((v + m - 1) // m) * m


def _pick_tile(dim, target, align=8):
    """Largest divisor of `dim` that is <= target and a multiple of `align`.
    Falls back to the full dimension only if no aligned divisor exists (full
    blocks are always legal)."""
    if dim <= target:
        return dim
    for t in range(min(target, dim), 0, -1):
        if dim % t == 0 and t % align == 0:
            return t
    return dim


def _vmem_limit_bytes():
    """Explicit scoped-VMEM budget per chip generation (review item)."""
    kind = ""
    try:
        kind = jax.devices()[0].device_kind.lower()
    except Exception:
        pass
    if "v7" in kind:              # v7x: 64 MiB VMEM per TensorCore
        return 48 * 1024 * 1024
    return 100 * 1024 * 1024      # v5e / v6e: 128 MiB physical VMEM


_BUFFERED_SINGLE_OK = None


def _probe_buffered_single():
    """One-time check that pipeline_mode=pl.Buffered(1) compiles and runs."""
    def _k(w_ref, x_ref, o_ref):
        o_ref[...] = x_ref[...] + w_ref[...]

    try:
        spec = pl.BlockSpec((8, 128), lambda i: (0, 0),
                            pipeline_mode=pl.Buffered(1))
        out = pl.pallas_call(
            _k,
            out_shape=jax.ShapeDtypeStruct((16, 128), jnp.float32),
            grid=(2,),
            in_specs=[spec, pl.BlockSpec((8, 128), lambda i: (i, 0))],
            out_specs=pl.BlockSpec((8, 128), lambda i: (i, 0)),
        )(jnp.zeros((8, 128), jnp.float32), jnp.zeros((16, 128), jnp.float32))
        jax.block_until_ready(out)
        return True
    except Exception:
        return False


def _const_spec(block_shape, index_map):
    """BlockSpec for grid-invariant (weight) blocks: fetched once; held in a
    single (non-double) buffer when the installed Pallas supports Buffered(1)."""
    global _BUFFERED_SINGLE_OK
    if _BUFFERED_SINGLE_OK is None:
        _BUFFERED_SINGLE_OK = _probe_buffered_single()
    if _BUFFERED_SINGLE_OK:
        return pl.BlockSpec(block_shape, index_map, pipeline_mode=pl.Buffered(1))
    return pl.BlockSpec(block_shape, index_map)


# ------------------------------- kernels -------------------------------------

def _qkv_kernel(x_ref, mod_ref, w_ref, b_ref, q_ref, k_ref, v_ref):
    """LayerNorm + modulate(shift_msa, scale_msa) + QKV projection.

    W_qkv was padded offline so the output columns are already in the
    head-padded lane layout [q | k | v], each of width H*Dp, with per-head
    slices at lane-aligned offsets h*Dp."""
    hdp = q_ref.shape[2]

    x = x_ref[0].astype(jnp.float32)                    # (tn, C)
    mod = mod_ref[0].astype(jnp.float32)                # (6, C)
    shift_msa = mod[0:1, :]
    scale_msa = mod[1:2, :]

    xm = _layernorm(x) * (1.0 + scale_msa) + shift_msa  # f32 VPU math
    w = w_ref[...]                                      # (C, 3*H*Dp)
    y = jnp.dot(xm.astype(w.dtype), w, preferred_element_type=jnp.float32)
    y = (y + b_ref[...].astype(jnp.float32)).astype(q_ref.dtype)

    q_ref[0] = y[:, 0 * hdp:1 * hdp]                    # lane-aligned static slices
    k_ref[0] = y[:, 1 * hdp:2 * hdp]
    v_ref[0] = y[:, 2 * hdp:3 * hdp]


def _flash_attn_kernel(q_ref, k_ref, v_ref, o_ref, *, kv_tile):
    """Online-softmax attention for one (batch, head, q-tile).

    Full K/V for the head are VMEM-resident (their block index is constant over
    the inner grid axis, so they are DMA'd once per head); KV tiles are looped
    inside the kernel, removing per-KV-tile grid-step overhead."""
    tq, dp = q_ref.shape[1], q_ref.shape[2]
    n_kv = k_ref.shape[1]
    q = q_ref[0]                                        # (tq, Dp); q-scale folded into W_qkv

    def body(j, carry):
        m_prev, l_prev, acc_prev = carry
        start = pl.multiple_of(j * kv_tile, kv_tile)
        kt = k_ref[0, pl.ds(start, kv_tile), :]         # (kv_tile, Dp)
        vt = v_ref[0, pl.ds(start, kv_tile), :]
        # Contract the last dims so K is consumed in its natural layout.
        s = jax.lax.dot_general(q, kt, (((1,), (1,)), ((), ())),
                                preferred_element_type=jnp.float32)   # (tq, kv_tile)
        m_new = jnp.maximum(m_prev, jnp.max(s, axis=-1, keepdims=True))
        alpha = jnp.exp(m_prev - m_new)
        p = jnp.exp(s - m_new)
        l_new = alpha * l_prev + jnp.sum(p, axis=-1, keepdims=True)
        acc_new = alpha * acc_prev + jnp.dot(
            p.astype(vt.dtype), vt, preferred_element_type=jnp.float32)
        return m_new, l_new, acc_new

    m0 = jnp.full((tq, 1), -jnp.inf, jnp.float32)
    l0 = jnp.zeros((tq, 1), jnp.float32)
    acc0 = jnp.zeros((tq, dp), jnp.float32)
    _, l, acc = jax.lax.fori_loop(0, n_kv // kv_tile, body, (m0, l0, acc0))

    # TODO(synk): pl.reciprocal(approx=True) trades ~1e-4 rel. error for an EUP
    # slot; switch to exact division for strict-parity use.
    o_ref[0] = (acc * pl.reciprocal(l, approx=True)).astype(o_ref.dtype)


def _proj_mlp_kernel(attn_ref, x_ref, mod_ref, wp_ref, bp_ref,
                     w1_ref, b1_ref, w2_ref, b2_ref, o_ref, *, mlp_chunk):
    """attn proj + gated residual + LayerNorm + modulate + MLP + gated residual.
    w_fc1/w_fc2 are fully VMEM-resident; the hidden dim is processed in
    lane-aligned chunks to bound the f32 temporaries."""
    cm = w1_ref.shape[1]

    mod = mod_ref[0].astype(jnp.float32)                # (6, C)
    gate_msa = mod[2:3, :]
    shift_mlp = mod[3:4, :]
    scale_mlp = mod[4:5, :]
    gate_mlp = mod[5:6, :]

    # Attention output projection: attn is (tn, H*Dp) head-padded; w_proj rows
    # were zero-padded to match -> a single dense matmul, no per-head slicing.
    a = attn_ref[0]
    proj = jnp.dot(a, wp_ref[...], preferred_element_type=jnp.float32)
    proj = proj + bp_ref[...].astype(jnp.float32)

    x1 = x_ref[0].astype(jnp.float32) + gate_msa * proj
    xm2 = _layernorm(x1) * (1.0 + scale_mlp) + shift_mlp

    wdt = w1_ref.dtype
    xm2_w = xm2.astype(wdt)
    mlp = jnp.zeros(x1.shape, jnp.float32)
    for s in range(0, cm, mlp_chunk):                   # static, lane-aligned chunks
        h = jnp.dot(xm2_w, w1_ref[:, s:s + mlp_chunk],
                    preferred_element_type=jnp.float32)
        h = _gelu_tanh(h + b1_ref[:, s:s + mlp_chunk].astype(jnp.float32))
        mlp = mlp + jnp.dot(h.astype(wdt), w2_ref[s:s + mlp_chunk, :],
                            preferred_element_type=jnp.float32)
    mlp = mlp + b2_ref[...].astype(jnp.float32)

    o_ref[0] = (x1 + gate_mlp * mlp).astype(o_ref.dtype)


# ------------------------------- wrapper --------------------------------------

@jax.jit
def dit_block(x, c, params):
    """DiTBlock forward. `params` must come from prepare_params (head-padded,
    q-scale folded). Returns (B, N, C) in x.dtype."""
    B, N, C = x.shape
    H, Dp, _ = params["w_proj"].shape                   # w_proj padded to (H, Dp, C)
    HDp = H * Dp
    Cm = params["w_fc1"].shape[1]
    pdt = params["w_qkv"].dtype

    tn1 = _pick_tile(N, 256)        # token tile, QKV kernel
    tq = _pick_tile(N, 512)         # query tile, attention kernel
    kv_tile = _pick_tile(N, 512)    # in-kernel KV tile, attention kernel
    tn3 = _pick_tile(N, 256)        # token tile, proj+MLP kernel
    mlp_chunk = _pick_tile(Cm, 1536, align=128)
    vmem = _vmem_limit_bytes()

    # ---- adaLN modulation: tiny (B, C) @ (C, 6C) matvec, kept in plain JAX.
    w_ada = params["w_ada"]
    silu_c = jax.nn.silu(c.astype(jnp.float32))
    ada = jnp.dot(silu_c.astype(w_ada.dtype), w_ada,
                  preferred_element_type=jnp.float32)
    ada = ada + params["b_ada"].astype(jnp.float32)
    # rows: [shift_msa, scale_msa, gate_msa, shift_mlp, scale_mlp, gate_mlp]
    mod = ada.reshape(B, 6, C)

    # ---- kernel 1: LN + modulate + QKV -> q/k/v in head-padded (B, N, H*Dp)
    q, k, v = pl.pallas_call(
        _qkv_kernel,
        out_shape=(jax.ShapeDtypeStruct((B, N, HDp), pdt),) * 3,
        grid=(N // tn1, B),                 # token axis leading (megacore-friendly)
        in_specs=[
            pl.BlockSpec((1, tn1, C), lambda i, b: (b, i, 0)),
            pl.BlockSpec((1, 6, C), lambda i, b: (b, 0, 0)),
            _const_spec((C, 3 * HDp), lambda i, b: (0, 0)),
            _const_spec((1, 3 * HDp), lambda i, b: (0, 0)),
        ],
        out_specs=(
            pl.BlockSpec((1, tn1, HDp), lambda i, b: (b, i, 0)),
            pl.BlockSpec((1, tn1, HDp), lambda i, b: (b, i, 0)),
            pl.BlockSpec((1, tn1, HDp), lambda i, b: (b, i, 0)),
        ),
        compiler_params=pltpu.CompilerParams(
            dimension_semantics=("parallel", "parallel"),
            vmem_limit_bytes=vmem),
    )(x, mod, params["w_qkv"], params["b_qkv"])

    # ---- kernel 2: flash attention; per-head lane slices chosen by index maps
    attn = pl.pallas_call(
        functools.partial(_flash_attn_kernel, kv_tile=kv_tile),
        out_shape=jax.ShapeDtypeStruct((B, N, HDp), pdt),
        grid=(B, H, N // tq),
        in_specs=[
            pl.BlockSpec((1, tq, Dp), lambda b, h, i: (b, i, h)),
            pl.BlockSpec((1, N, Dp), lambda b, h, i: (b, 0, h)),   # full K per head
            pl.BlockSpec((1, N, Dp), lambda b, h, i: (b, 0, h)),   # full V per head
        ],
        out_specs=pl.BlockSpec((1, tq, Dp), lambda b, h, i: (b, i, h)),
        compiler_params=pltpu.CompilerParams(
            dimension_semantics=("parallel", "parallel", "parallel"),
            vmem_limit_bytes=vmem),
    )(q, k, v)

    # ---- kernel 3: proj + gated residual + LN + modulate + MLP + gated residual
    w_proj2 = params["w_proj"].reshape(HDp, C)          # free reshape (leading dims)
    out = pl.pallas_call(
        functools.partial(_proj_mlp_kernel, mlp_chunk=mlp_chunk),
        out_shape=jax.ShapeDtypeStruct((B, N, C), x.dtype),
        grid=(N // tn3, B),
        in_specs=[
            pl.BlockSpec((1, tn3, HDp), lambda i, b: (b, i, 0)),    # attn (head-padded)
            pl.BlockSpec((1, tn3, C), lambda i, b: (b, i, 0)),      # x (residual)
            pl.BlockSpec((1, 6, C), lambda i, b: (b, 0, 0)),        # modulation
            _const_spec((HDp, C), lambda i, b: (0, 0)),             # w_proj (padded rows)
            _const_spec((1, C), lambda i, b: (0, 0)),               # b_proj
            _const_spec((C, Cm), lambda i, b: (0, 0)),              # w_fc1 (resident)
            _const_spec((1, Cm), lambda i, b: (0, 0)),              # b_fc1
            _const_spec((Cm, C), lambda i, b: (0, 0)),              # w_fc2 (resident)
            _const_spec((1, C), lambda i, b: (0, 0)),               # b_fc2
        ],
        out_specs=pl.BlockSpec((1, tn3, C), lambda i, b: (b, i, 0)),
        compiler_params=pltpu.CompilerParams(
            dimension_semantics=("parallel", "parallel"),
            vmem_limit_bytes=vmem),
    )(attn, x, mod, w_proj2, params["b_proj"],
      params["w_fc1"], params["b_fc1"], params["w_fc2"], params["b_fc2"])

    return out


# ------------------------------ parameters ------------------------------------

def init_params(key, hidden_size, mlp_ratio=4.0):
    """Module-style parameters (Linear weights stored as (in, out))."""
    C = hidden_size
    Cm = int(C * mlp_ratio)
    ks = jax.random.split(key, 10)

    def lin(k, din, dout, scale=0.02):
        return scale * jax.random.normal(k, (din, dout), jnp.float32)

    return {
        "w_ada": lin(ks[0], C, 6 * C),
        "b_ada": 0.01 * jax.random.normal(ks[1], (1, 6 * C), jnp.float32),
        "w_qkv": lin(ks[2], C, 3 * C),
        "b_qkv": 0.01 * jax.random.normal(ks[3], (1, 3 * C), jnp.float32),
        "w_proj": lin(ks[4], C, C),
        "b_proj": 0.01 * jax.random.normal(ks[5], (1, C), jnp.float32),
        "w_fc1": lin(ks[6], C, Cm),
        "b_fc1": 0.01 * jax.random.normal(ks[7], (1, Cm), jnp.float32),
        "w_fc2": lin(ks[8], Cm, C),
        "b_fc2": 0.01 * jax.random.normal(ks[9], (1, C), jnp.float32),
    }


def prepare_params(params, num_heads, dtype=jnp.bfloat16):
    """One-time offline transform:
      * fold head_dim**-0.5 into the q columns of the QKV projection,
      * zero-pad the head dim to a lane-aligned Dp = ceil(D/128)*128 in
        W_qkv/b_qkv columns (head-padded layout used by the attention kernel)
        and in W_proj rows (stored as (H, Dp, C)),
      * cast everything to the storage/compute dtype (bf16 or f32)."""
    C = params["w_qkv"].shape[0]
    H = num_heads
    D = C // H
    Dp = _round_up(D, 128)
    pad = Dp - D
    scale = D ** -0.5

    w_qkv = params["w_qkv"].reshape(C, 3, H, D)
    b_qkv = params["b_qkv"].reshape(3, H, D)
    qscale = jnp.array([scale, 1.0, 1.0], jnp.float32)
    w_qkv = w_qkv * qscale[None, :, None, None]
    b_qkv = b_qkv * qscale[:, None, None]
    w_qkv = jnp.pad(w_qkv, ((0, 0), (0, 0), (0, 0), (0, pad)))
    b_qkv = jnp.pad(b_qkv, ((0, 0), (0, 0), (0, pad)))

    w_proj = params["w_proj"].reshape(H, D, C)
    w_proj = jnp.pad(w_proj, ((0, 0), (0, pad), (0, 0)))     # (H, Dp, C)

    out = dict(params)
    out["w_qkv"] = w_qkv.reshape(C, 3 * H * Dp)
    out["b_qkv"] = b_qkv.reshape(1, 3 * H * Dp)
    out["w_proj"] = w_proj
    return jax.tree_util.tree_map(lambda p: p.astype(dtype), out)


# ------------------------------ reference -------------------------------------

def dit_block_ref(x, c, p, num_heads):
    """Pure-JAX f32 reference matching the PyTorch module (unpadded params)."""
    B, N, C = x.shape
    H, D = num_heads, C // num_heads
    ada = jax.nn.silu(c) @ p["w_ada"] + p["b_ada"]
    sm, scm, gm, sp, scp, gp = jnp.split(ada, 6, axis=-1)

    def modulate(z, shift, sc):
        return z * (1.0 + sc[:, None, :]) + shift[:, None, :]

    xn = modulate(_layernorm(x), sm, scm)
    qkv = xn @ p["w_qkv"] + p["b_qkv"]
    qkv = qkv.reshape(B, N, 3, H, D).transpose(2, 0, 3, 1, 4)
    q, k, v = qkv[0] * D ** (-0.5), qkv[1], qkv[2]
    attn = jax.nn.softmax(jnp.einsum("bhnd,bhmd->bhnm", q, k), axis=-1)
    o = jnp.einsum("bhnm,bhmd->bhnd", attn, v).transpose(0, 2, 1, 3).reshape(B, N, C)
    o = o @ p["w_proj"] + p["b_proj"]
    x1 = x + gm[:, None, :] * o

    xn2 = modulate(_layernorm(x1), sp, scp)
    hdn = _gelu_tanh(xn2 @ p["w_fc1"] + p["b_fc1"])
    mlp = hdn @ p["w_fc2"] + p["b_fc2"]
    return x1 + gp[:, None, :] * mlp


# --------------------------------- main ----------------------------------------

if __name__ == "__main__":
    B, N, C, H = 2, 8, 32, 4   # batch, tokens, hidden_size, num_heads

    key = jax.random.PRNGKey(0)
    kx, kc, kp = jax.random.split(key, 3)
    x = jax.random.normal(kx, (B, N, C), jnp.float32)
    c = jax.random.normal(kc, (B, C), jnp.float32)
    params = init_params(kp, C, mlp_ratio=4.0)

    # Populate the Buffered(1) capability probe outside of any jit trace.
    _const_spec((8, 128), lambda i: (0, 0))

    ref = dit_block_ref(x, c, params, H)

    # f32 params: semantics check (matmul / approx-reciprocal roundoff only).
    prep32 = prepare_params(params, H, dtype=jnp.float32)
    out32 = jax.block_until_ready(dit_block(x, c, prep32))
    np.testing.assert_allclose(np.asarray(out32), np.asarray(ref),
                               rtol=5e-3, atol=5e-3)

    # bf16 weights/activations (the performance configuration), compared against
    # an f32-math reference evaluated on the bf16-quantized inputs/params.
    prep16 = prepare_params(params, H, dtype=jnp.bfloat16)
    x16 = x.astype(jnp.bfloat16)
    out16 = jax.block_until_ready(dit_block(x16, c, prep16))
    params_q = jax.tree_util.tree_map(
        lambda p: p.astype(jnp.bfloat16).astype(jnp.float32), params)
    ref16 = dit_block_ref(x16.astype(jnp.float32), c, params_q, H)
    np.testing.assert_allclose(np.asarray(out16.astype(jnp.float32)),
                               np.asarray(ref16), rtol=3e-2, atol=3e-2)

    print("KERNEL_OK")
</pallas_src>

<mosaic_0001>
module attributes {stable_mosaic.version = 11 : i64} {
  func.func @_k(%arg0: i32, %arg1: memref<8x128xf32, #tpu.memory_space<vmem>>, %arg2: memref<8x128xf32, #tpu.memory_space<vmem>>, %arg3: memref<8x128xf32, #tpu.memory_space<vmem>>) attributes {dimension_semantics = [#tpu.dimension_semantics<arbitrary>], iteration_bounds = array<i64: 2>, scalar_prefetch = 0 : i64, scratch_operands = 0 : i64, tpu.core_type = #tpu.core_type<tc>, window_params = [{pipeline_mode = #tpu.pipeline_mode<synchronous>, transform_indices = @transform_0, window_bounds = array<i64: 8, 128>}, {transform_indices = @transform_1, window_bounds = array<i64: 8, 128>}, {transform_indices = @transform_2, window_bounds = array<i64: 8, 128>}]} {
    %c0 = arith.constant 0 : index
    %c0_0 = arith.constant 0 : index
    %0 = vector.load %arg2[%c0, %c0_0] : memref<8x128xf32, #tpu.memory_space<vmem>>, vector<8x128xf32>
    %c0_1 = arith.constant 0 : index
    %c0_2 = arith.constant 0 : index
    %1 = vector.load %arg1[%c0_1, %c0_2] : memref<8x128xf32, #tpu.memory_space<vmem>>, vector<8x128xf32>
    %2 = arith.addf %0, %1 : vector<8x128xf32>
    %c0_3 = arith.constant 0 : index
    %c0_4 = arith.constant 0 : index
    %3 = vector.load %arg3[%c0_3, %c0_4] : memref<8x128xf32, #tpu.memory_space<vmem>>, vector<8x128xf32>
    tpu.vector_store %arg3[%c0_3, %c0_4], %2 {strides = array<i32>} : memref<8x128xf32, #tpu.memory_space<vmem>>, vector<8x128xf32>,
    return
  }
  func.func @transform_0(%arg0: i32) -> (i32, i32) {
    %c0_i32 = arith.constant 0 : i32
    %c0_i32_0 = arith.constant 0 : i32
    %c0_i32_1 = arith.constant 0 : i32
    return %c0_i32, %c0_i32_0 : i32, i32
  }
  func.func @transform_1(%arg0: i32) -> (i32, i32) {
    %c0_i32 = arith.constant 0 : i32
    %c0_i32_0 = arith.constant 0 : i32
    return %arg0, %c0_i32 : i32, i32
  }
  func.func @transform_2(%arg0: i32) -> (i32, i32) {
    %c0_i32 = arith.constant 0 : i32
    %c0_i32_0 = arith.constant 0 : i32
    return %arg0, %c0_i32 : i32, i32
  }
}

module attributes {stable_mosaic.version = 11 : i64} {
  func.func @_qkv_kernel(%arg0: i32, %arg1: i32, %arg2: memref<1x8x32xf32, #tpu.memory_space<vmem>>, %arg3: memref<1x6x32xf32, #tpu.memory_space<vmem>>, %arg4: memref<32x1536xf32, #tpu.memory_space<vmem>>, %arg5: memref<1x1536xf32, #tpu.memory_space<vmem>>, %arg6: memref<1x8x512xf32, #tpu.memory_space<vmem>>, %arg7: memref<1x8x512xf32, #tpu.memory_space<vmem>>, %arg8: memref<1x8x512xf32, #tpu.memory_space<vmem>>) attributes {dimension_semantics = [#tpu.dimension_semantics<parallel>, #tpu.dimension_semantics<parallel>], iteration_bounds = array<i64: 1, 2>, scalar_prefetch = 0 : i64, scratch_operands = 0 : i64, tpu.core_type = #tpu.core_type<tc>, window_params = [{transform_indices = @transform_0, window_bounds = array<i64: 1, 8, 32>}, {transform_indices = @transform_1, window_bounds = array<i64: 1, 6, 32>}, {pipeline_mode = #tpu.pipeline_mode<synchronous>, transform_indices = @transform_2, window_bounds = array<i64: 32, 1536>}, {pipeline_mode = #tpu.pipeline_mode<synchronous>, transform_indices = @transform_3, window_bounds = array<i64: 1, 1536>}, {transform_indices = @transform_4, window_bounds = array<i64: 1, 8, 512>}, {transform_indices = @transform_5, window_bounds = array<i64: 1, 8, 512>}, {transform_indices = @transform_6, window_bounds = array<i64: 1, 8, 512>}]} {
    %c0 = arith.constant 0 : index
    %c0_0 = arith.constant 0 : index
    %c0_1 = arith.constant 0 : index
    %0 = vector.load %arg2[%c0, %c0_0, %c0_1] : memref<1x8x32xf32, #tpu.memory_space<vmem>>, vector<1x8x32xf32>
    %1 = vector.shape_cast %0 : vector<1x8x32xf32> to vector<8x32xf32>
    %c0_2 = arith.constant 0 : index
    %c0_3 = arith.constant 0 : index
    %c0_4 = arith.constant 0 : index
    %2 = vector.load %arg3[%c0_2, %c0_3, %c0_4] : memref<1x6x32xf32, #tpu.memory_space<vmem>>, vector<1x6x32xf32>
    %3 = vector.shape_cast %2 : vector<1x6x32xf32> to vector<6x32xf32>
    %4 = vector.extract_strided_slice %3 {offsets = [0, 0], sizes = [1, 32], strides = [1, 1]} : vector<6x32xf32> to vector<1x32xf32>
    %5 = vector.extract_strided_slice %3 {offsets = [1, 0], sizes = [1, 32], strides = [1, 1]} : vector<6x32xf32> to vector<1x32xf32>
    %cst = arith.constant dense<0.000000e+00> : vector<8xf32>
    %6 = vector.multi_reduction <add>, %1, %cst [1] : vector<8x32xf32> to vector<8xf32>
    %7 = vector.shape_cast %6 : vector<8xf32> to vector<8x1xf32>
    %cst_5 = arith.constant 3.200000e+01 : f32
    %8 = vector.broadcast %cst_5 : f32 to vector<8x1xf32>
    %9 = arith.divf %7, %8 : vector<8x1xf32>
    %10 = vector.broadcast %9 : vector<8x1xf32> to vector<8x32xf32>
    %11 = arith.subf %1, %10 : vector<8x32xf32>
    %12 = arith.mulf %11, %11 : vector<8x32xf32>
    %cst_6 = arith.constant dense<0.000000e+00> : vector<8xf32>
    %13 = vector.multi_reduction <add>, %12, %cst_6 [1] : vector<8x32xf32> to vector<8xf32>
    %14 = vector.shape_cast %13 : vector<8xf32> to vector<8x1xf32>
    %cst_7 = arith.constant 3.200000e+01 : f32
    %15 = vector.broadcast %cst_7 : f32 to vector<8x1xf32>
    %16 = arith.divf %14, %15 : vector<8x1xf32>
    %17 = vector.broadcast %9 : vector<8x1xf32> to vector<8x32xf32>
    %18 = arith.subf %1, %17 : vector<8x32xf32>
    %cst_8 = arith.constant 9.99999997E-7 : f32
    %19 = vector.broadcast %cst_8 : f32 to vector<8x1xf32>
    %20 = arith.addf %16, %19 : vector<8x1xf32>
    %21 = math.sqrt %20 : vector<8x1xf32>
    %22 = vector.broadcast %21 : vector<8x1xf32> to vector<8x32xf32>
    %23 = arith.divf %18, %22 : vector<8x32xf32>
    %cst_9 = arith.constant 1.000000e+00 : f32
    %24 = vector.broadcast %cst_9 : f32 to vector<1x32xf32>
    %25 = arith.addf %24, %5 : vector<1x32xf32>
    %26 = vector.broadcast %25 : vector<1x32xf32> to vector<8x32xf32>
    %27 = arith.mulf %23, %26 : vector<8x32xf32>
    %28 = vector.broadcast %4 : vector<1x32xf32> to vector<8x32xf32>
    %29 = arith.addf %27, %28 : vector<8x32xf32>
    %c0_10 = arith.constant 0 : index
    %c0_11 = arith.constant 0 : index
    %30 = vector.load %arg4[%c0_10, %c0_11] : memref<32x1536xf32, #tpu.memory_space<vmem>>, vector<32x1536xf32>
    %cst_12 = arith.constant dense<0.000000e+00> : vector<8x1536xf32>
    %31 = tpu.matmul %29, %30, %cst_12 {dimension_numbers = #tpu.dot_dimension_numbers<[1], [0], [0], [1], [0, 0, 1, 1], [], []>} : vector<8x32xf32>, vector<32x1536xf32>, vector<8x1536xf32> -> vector<8x1536xf32>
    %c0_13 = arith.constant 0 : index
    %c0_14 = arith.constant 0 : index
    %32 = vector.load %arg5[%c0_13, %c0_14] : memref<1x1536xf32, #tpu.memory_space<vmem>>, vector<1x1536xf32>
    %33 = vector.broadcast %32 : vector<1x1536xf32> to vector<8x1536xf32>
    %34 = arith.addf %31, %33 : vector<8x1536xf32>
    %35 = vector.extract_strided_slice %34 {offsets = [0, 0], sizes = [8, 512], strides = [1, 1]} : vector<8x1536xf32> to vector<8x512xf32>
    %c0_15 = arith.constant 0 : index
    %c0_16 = arith.constant 0 : index
    %c0_17 = arith.constant 0 : index
    %36 = vector.load %arg6[%c0_15, %c0_16, %c0_17] : memref<1x8x512xf32, #tpu.memory_space<vmem>>, vector<1x8x512xf32>
    %37 = vector.shape_cast %36 : vector<1x8x512xf32> to vector<8x512xf32>
    %38 = vector.shape_cast %35 : vector<8x512xf32> to vector<1x8x512xf32>
    tpu.vector_store %arg6[%c0_15, %c0_16, %c0_17], %38 {strides = array<i32>} : memref<1x8x512xf32, #tpu.memory_space<vmem>>, vector<1x8x512xf32>,
    %39 = vector.extract_strided_slice %34 {offsets = [0, 512], sizes = [8, 512], strides = [1, 1]} : vector<8x1536xf32> to vector<8x512xf32>
    %c0_18 = arith.constant 0 : index
    %c0_19 = arith.constant 0 : index
    %c0_20 = arith.constant 0 : index
    %40 = vector.load %arg7[%c0_18, %c0_19, %c0_20] : memref<1x8x512xf32, #tpu.memory_space<vmem>>, vector<1x8x512xf32>
    %41 = vector.shape_cast %40 : vector<1x8x512xf32> to vector<8x512xf32>
    %42 = vector.shape_cast %39 : vector<8x512xf32> to vector<1x8x512xf32>
    tpu.vector_store %arg7[%c0_18, %c0_19, %c0_20], %42 {strides = array<i32>} : memref<1x8x512xf32, #tpu.memory_space<vmem>>, vector<1x8x512xf32>,
    %43 = vector.extract_strided_slice %34 {offsets = [0, 1024], sizes = [8, 512], strides = [1, 1]} : vector<8x1536xf32> to vector<8x512xf32>
    %c0_21 = arith.constant 0 : index
    %c0_22 = arith.constant 0 : index
    %c0_23 = arith.constant 0 : index
    %44 = vector.load %arg8[%c0_21, %c0_22, %c0_23] : memref<1x8x512xf32, #tpu.memory_space<vmem>>, vector<1x8x512xf32>
    %45 = vector.shape_cast %44 : vector<1x8x512xf32> to vector<8x512xf32>
    %46 = vector.shape_cast %43 : vector<8x512xf32> to vector<1x8x512xf32>
    tpu.vector_store %arg8[%c0_21, %c0_22, %c0_23], %46 {strides = array<i32>} : memref<1x8x512xf32, #tpu.memory_space<vmem>>, vector<1x8x512xf32>,
    return
  }
  func.func @transform_0(%arg0: i32, %arg1: i32) -> (i32, i32, i32) {
    %c0_i32 = arith.constant 0 : i32
    %c0_i32_0 = arith.constant 0 : i32
    return %arg1, %arg0, %c0_i32 : i32, i32, i32
  }
  func.func @transform_1(%arg0: i32, %arg1: i32) -> (i32, i32, i32) {
    %c0_i32 = arith.constant 0 : i32
    %c0_i32_0 = arith.constant 0 : i32
    %c0_i32_1 = arith.constant 0 : i32
    return %arg1, %c0_i32, %c0_i32_0 : i32, i32, i32
  }
  func.func @transform_2(%arg0: i32, %arg1: i32) -> (i32, i32) {
    %c0_i32 = arith.constant 0 : i32
    %c0_i32_0 = arith.constant 0 : i32
    %c0_i32_1 = arith.constant 0 : i32
    return %c0_i32, %c0_i32_0 : i32, i32
  }
  func.func @transform_3(%arg0: i32, %arg1: i32) -> (i32, i32) {
    %c0_i32 = arith.constant 0 : i32
    %c0_i32_0 = arith.constant 0 : i32
    %c0_i32_1 = arith.constant 0 : i32
    return %c0_i32, %c0_i32_0 : i32, i32
  }
  func.func @transform_4(%arg0: i32, %arg1: i32) -> (i32, i32, i32) {
    %c0_i32 = arith.constant 0 : i32
    %c0_i32_0 = arith.constant 0 : i32
    return %arg1, %arg0, %c0_i32 : i32, i32, i32
  }
  func.func @transform_5(%arg0: i32, %arg1: i32) -> (i32, i32, i32) {
    %c0_i32 = arith.constant 0 : i32
    %c0_i32_0 = arith.constant 0 : i32
    return %arg1, %arg0, %c0_i32 : i32, i32, i32
  }
  func.func @transform_6(%arg0: i32, %arg1: i32) -> (i32, i32, i32) {
    %c0_i32 = arith.constant 0 : i32
    %c0_i32_0 = arith.constant 0 : i32
    return %arg1, %arg0, %c0_i32 : i32, i32, i32
  }
}

module attributes {stable_mosaic.version = 11 : i64} {
  func.func @_flash_attn_kernel(%arg0: i32, %arg1: i32, %arg2: i32, %arg3: memref<1x8x128xf32, #tpu.memory_space<vmem>>, %arg4: memref<1x8x128xf32, #tpu.memory_space<vmem>>, %arg5: memref<1x8x128xf32, #tpu.memory_space<vmem>>, %arg6: memref<1x8x128xf32, #tpu.memory_space<vmem>>) attributes {dimension_semantics = [#tpu.dimension_semantics<parallel>, #tpu.dimension_semantics<parallel>, #tpu.dimension_semantics<parallel>], iteration_bounds = array<i64: 2, 4, 1>, scalar_prefetch = 0 : i64, scratch_operands = 0 : i64, tpu.core_type = #tpu.core_type<tc>, window_params = [{transform_indices = @transform_0, window_bounds = array<i64: 1, 8, 128>}, {transform_indices = @transform_1, window_bounds = array<i64: 1, 8, 128>}, {transform_indices = @transform_2, window_bounds = array<i64: 1, 8, 128>}, {transform_indices = @transform_3, window_bounds = array<i64: 1, 8, 128>}]} {
    %c0 = arith.constant 0 : index
    %c0_0 = arith.constant 0 : index
    %c0_1 = arith.constant 0 : index
    %0 = vector.load %arg3[%c0, %c0_0, %c0_1] : memref<1x8x128xf32, #tpu.memory_space<vmem>>, vector<1x8x128xf32>
    %1 = vector.shape_cast %0 : vector<1x8x128xf32> to vector<8x128xf32>
    %cst = arith.constant 0xFF800000 : f32
    %2 = vector.broadcast %cst : f32 to vector<8x1xf32>
    %cst_2 = arith.constant 0.000000e+00 : f32
    %3 = vector.broadcast %cst_2 : f32 to vector<8x1xf32>
    %cst_3 = arith.constant 0.000000e+00 : f32
    %4 = vector.broadcast %cst_3 : f32 to vector<8x128xf32>
    %c0_i32 = arith.constant 0 : i32
    %c8_i32 = arith.constant 8 : i32
    %5 = arith.muli %c0_i32, %c8_i32 : i32
    %6 = tpu.assume_multiple %5, 8 : i32
    %c0_4 = arith.constant 0 : index
    %7 = arith.index_cast %6 : i32 to index
    %c0_5 = arith.constant 0 : index
    %8 = vector.load %arg4[%c0_4, %7, %c0_5] : memref<1x8x128xf32, #tpu.memory_space<vmem>>, vector<1x8x128xf32>
    %9 = vector.shape_cast %8 : vector<1x8x128xf32> to vector<8x128xf32>
    %c0_6 = arith.constant 0 : index
    %10 = arith.index_cast %6 : i32 to index
    %c0_7 = arith.constant 0 : index
    %11 = vector.load %arg5[%c0_6, %10, %c0_7] : memref<1x8x128xf32, #tpu.memory_space<vmem>>, vector<1x8x128xf32>
    %12 = vector.shape_cast %11 : vector<1x8x128xf32> to vector<8x128xf32>
    %cst_8 = arith.constant dense<0.000000e+00> : vector<8x8xf32>
    %13 = tpu.matmul %1, %9, %cst_8 {dimension_numbers = #tpu.dot_dimension_numbers<[1], [1], [0], [0], [0, 0, 1, 0], [], []>} : vector<8x128xf32>, vector<8x128xf32>, vector<8x8xf32> -> vector<8x8xf32>
    %cst_9 = arith.constant dense<0xFF800000> : vector<8xf32>
    %14 = vector.multi_reduction <maximumf>, %13, %cst_9 [1] : vector<8x8xf32> to vector<8xf32>
    %15 = vector.shape_cast %14 : vector<8xf32> to vector<8x1xf32>
    %16 = arith.maximumf %2, %15 : vector<8x1xf32>
    %17 = arith.subf %2, %16 : vector<8x1xf32>
    %18 = math.exp %17 : vector<8x1xf32>
    %19 = vector.broadcast %16 : vector<8x1xf32> to vector<8x8xf32>
    %20 = arith.subf %13, %19 : vector<8x8xf32>
    %21 = math.exp %20 : vector<8x8xf32>
    %22 = arith.mulf %18, %3 : vector<8x1xf32>
    %cst_10 = arith.constant dense<0.000000e+00> : vector<8xf32>
    %23 = vector.multi_reduction <add>, %21, %cst_10 [1] : vector<8x8xf32> to vector<8xf32>
    %24 = vector.shape_cast %23 : vector<8xf32> to vector<8x1xf32>
    %25 = arith.addf %22, %24 : vector<8x1xf32>
    %26 = vector.broadcast %18 : vector<8x1xf32> to vector<8x128xf32>
    %27 = arith.mulf %26, %4 : vector<8x128xf32>
    %cst_11 = arith.constant dense<0.000000e+00> : vector<8x128xf32>
    %28 = tpu.matmul %21, %12, %cst_11 {dimension_numbers = #tpu.dot_dimension_numbers<[1], [0], [0], [1], [0, 0, 1, 1], [], []>} : vector<8x8xf32>, vector<8x128xf32>, vector<8x128xf32> -> vector<8x128xf32>
    %29 = arith.addf %27, %28 : vector<8x128xf32>
    %c1_i32 = arith.constant 1 : i32
    %30 = tpu.reciprocal %25 {approx = true} : vector<8x1xf32> -> vector<8x1xf32>
    %31 = vector.broadcast %30 : vector<8x1xf32> to vector<8x128xf32>
    %32 = arith.mulf %29, %31 : vector<8x128xf32>
    %c0_12 = arith.constant 0 : index
    %c0_13 = arith.constant 0 : index
    %c0_14 = arith.constant 0 : index
    %33 = vector.load %arg6[%c0_12, %c0_13, %c0_14] : memref<1x8x128xf32, #tpu.memory_space<vmem>>, vector<1x8x128xf32>
    %34 = vector.shape_cast %33 : vector<1x8x128xf32> to vector<8x128xf32>
    %35 = vector.shape_cast %32 : vector<8x128xf32> to vector<1x8x128xf32>
    tpu.vector_store %arg6[%c0_12, %c0_13, %c0_14], %35 {strides = array<i32>} : memref<1x8x128xf32, #tpu.memory_space<vmem>>, vector<1x8x128xf32>,
    return
  }
  func.func @transform_0(%arg0: i32, %arg1: i32, %arg2: i32) -> (i32, i32, i32) {
    %c0_i32 = arith.constant 0 : i32
    return %arg0, %arg2, %arg1 : i32, i32, i32
  }
  func.func @transform_1(%arg0: i32, %arg1: i32, %arg2: i32) -> (i32, i32, i32) {
    %c0_i32 = arith.constant 0 : i32
    %c0_i32_0 = arith.constant 0 : i32
    return %arg0, %c0_i32, %arg1 : i32, i32, i32
  }
  func.func @transform_2(%arg0: i32, %arg1: i32, %arg2: i32) -> (i32, i32, i32) {
    %c0_i32 = arith.constant 0 : i32
    %c0_i32_0 = arith.constant 0 : i32
    return %arg0, %c0_i32, %arg1 : i32, i32, i32
  }
  func.func @transform_3(%arg0: i32, %arg1: i32, %arg2: i32) -> (i32, i32, i32) {
    %c0_i32 = arith.constant 0 : i32
    return %arg0, %arg2, %arg1 : i32, i32, i32
  }
}

module attributes {stable_mosaic.version = 11 : i64} {
  func.func @_proj_mlp_kernel(%arg0: i32, %arg1: i32, %arg2: memref<1x8x512xf32, #tpu.memory_space<vmem>>, %arg3: memref<1x8x32xf32, #tpu.memory_space<vmem>>, %arg4: memref<1x6x32xf32, #tpu.memory_space<vmem>>, %arg5: memref<512x32xf32, #tpu.memory_space<vmem>>, %arg6: memref<1x32xf32, #tpu.memory_space<vmem>>, %arg7: memref<32x128xf32, #tpu.memory_space<vmem>>, %arg8: memref<1x128xf32, #tpu.memory_space<vmem>>, %arg9: memref<128x32xf32, #tpu.memory_space<vmem>>, %arg10: memref<1x32xf32, #tpu.memory_space<vmem>>, %arg11: memref<1x8x32xf32, #tpu.memory_space<vmem>>) attributes {dimension_semantics = [#tpu.dimension_semantics<parallel>, #tpu.dimension_semantics<parallel>], iteration_bounds = array<i64: 1, 2>, scalar_prefetch = 0 : i64, scratch_operands = 0 : i64, tpu.core_type = #tpu.core_type<tc>, window_params = [{transform_indices = @transform_0, window_bounds = array<i64: 1, 8, 512>}, {transform_indices = @transform_1, window_bounds = array<i64: 1, 8, 32>}, {transform_indices = @transform_2, window_bounds = array<i64: 1, 6, 32>}, {pipeline_mode = #tpu.pipeline_mode<synchronous>, transform_indices = @transform_3, window_bounds = array<i64: 512, 32>}, {pipeline_mode = #tpu.pipeline_mode<synchronous>, transform_indices = @transform_4, window_bounds = array<i64: 1, 32>}, {pipeline_mode = #tpu.pipeline_mode<synchronous>, transform_indices = @transform_5, window_bounds = array<i64: 32, 128>}, {pipeline_mode = #tpu.pipeline_mode<synchronous>, transform_indices = @transform_6, window_bounds = array<i64: 1, 128>}, {pipeline_mode = #tpu.pipeline_mode<synchronous>, transform_indices = @transform_7, window_bounds = array<i64: 128, 32>}, {pipeline_mode = #tpu.pipeline_mode<synchronous>, transform_indices = @transform_8, window_bounds = array<i64: 1, 32>}, {transform_indices = @transform_9, window_bounds = array<i64: 1, 8, 32>}]} {
    %c0 = arith.constant 0 : index
    %c0_0 = arith.constant 0 : index
    %c0_1 = arith.constant 0 : index
    %0 = vector.load %arg4[%c0, %c0_0, %c0_1] : memref<1x6x32xf32, #tpu.memory_space<vmem>>, vector<1x6x32xf32>
    %1 = vector.shape_cast %0 : vector<1x6x32xf32> to vector<6x32xf32>
    %2 = vector.extract_strided_slice %1 {offsets = [2, 0], sizes = [1, 32], strides = [1, 1]} : vector<6x32xf32> to vector<1x32xf32>
    %3 = vector.extract_strided_slice %1 {offsets = [3, 0], sizes = [1, 32], strides = [1, 1]} : vector<6x32xf32> to vector<1x32xf32>
    %4 = vector.extract_strided_slice %1 {offsets = [4, 0], sizes = [1, 32], strides = [1, 1]} : vector<6x32xf32> to vector<1x32xf32>
    %5 = vector.extract_strided_slice %1 {offsets = [5, 0], sizes = [1, 32], strides = [1, 1]} : vector<6x32xf32> to vector<1x32xf32>
    %c0_2 = arith.constant 0 : index
    %c0_3 = arith.constant 0 : index
    %c0_4 = arith.constant 0 : index
    %6 = vector.load %arg2[%c0_2, %c0_3, %c0_4] : memref<1x8x512xf32, #tpu.memory_space<vmem>>, vector<1x8x512xf32>
    %7 = vector.shape_cast %6 : vector<1x8x512xf32> to vector<8x512xf32>
    %c0_5 = arith.constant 0 : index
    %c0_6 = arith.constant 0 : index
    %8 = vector.load %arg5[%c0_5, %c0_6] : memref<512x32xf32, #tpu.memory_space<vmem>>, vector<512x32xf32>
    %cst = arith.constant dense<0.000000e+00> : vector<8x32xf32>
    %9 = tpu.matmul %7, %8, %cst {dimension_numbers = #tpu.dot_dimension_numbers<[1], [0], [0], [1], [0, 0, 1, 1], [], []>} : vector<8x512xf32>, vector<512x32xf32>, vector<8x32xf32> -> vector<8x32xf32>
    %c0_7 = arith.constant 0 : index
    %c0_8 = arith.constant 0 : index
    %10 = vector.load %arg6[%c0_7, %c0_8] : memref<1x32xf32, #tpu.memory_space<vmem>>, vector<1x32xf32>
    %11 = vector.broadcast %10 : vector<1x32xf32> to vector<8x32xf32>
    %12 = arith.addf %9, %11 : vector<8x32xf32>
    %c0_9 = arith.constant 0 : index
    %c0_10 = arith.constant 0 : index
    %c0_11 = arith.constant 0 : index
    %13 = vector.load %arg3[%c0_9, %c0_10, %c0_11] : memref<1x8x32xf32, #tpu.memory_space<vmem>>, vector<1x8x32xf32>
    %14 = vector.shape_cast %13 : vector<1x8x32xf32> to vector<8x32xf32>
    %15 = vector.broadcast %2 : vector<1x32xf32> to vector<8x32xf32>
    %16 = arith.mulf %15, %12 : vector<8x32xf32>
    %17 = arith.addf %14, %16 : vector<8x32xf32>
    %cst_12 = arith.constant dense<0.000000e+00> : vector<8xf32>
    %18 = vector.multi_reduction <add>, %17, %cst_12 [1] : vector<8x32xf32> to vector<8xf32>
    %19 = vector.shape_cast %18 : vector<8xf32> to vector<8x1xf32>
    %cst_13 = arith.constant 3.200000e+01 : f32
    %20 = vector.broadcast %cst_13 : f32 to vector<8x1xf32>
    %21 = arith.divf %19, %20 : vector<8x1xf32>
    %22 = vector.broadcast %21 : vector<8x1xf32> to vector<8x32xf32>
    %23 = arith.subf %17, %22 : vector<8x32xf32>
    %24 = arith.mulf %23, %23 : vector<8x32xf32>
    %cst_14 = arith.constant dense<0.000000e+00> : vector<8xf32>
    %25 = vector.multi_reduction <add>, %24, %cst_14 [1] : vector<8x32xf32> to vector<8xf32>
    %26 = vector.shape_cast %25 : vector<8xf32> to vector<8x1xf32>
    %cst_15 = arith.constant 3.200000e+01 : f32
    %27 = vector.broadcast %cst_15 : f32 to vector<8x1xf32>
    %28 = arith.divf %26, %27 : vector<8x1xf32>
    %29 = vector.broadcast %21 : vector<8x1xf32> to vector<8x32xf32>
    %30 = arith.subf %17, %29 : vector<8x32xf32>
    %cst_16 = arith.constant 9.99999997E-7 : f32
    %31 = vector.broadcast %cst_16 : f32 to vector<8x1xf32>
    %32 = arith.addf %28, %31 : vector<8x1xf32>
    %33 = math.sqrt %32 : vector<8x1xf32>
    %34 = vector.broadcast %33 : vector<8x1xf32> to vector<8x32xf32>
    %35 = arith.divf %30, %34 : vector<8x32xf32>
    %cst_17 = arith.constant 1.000000e+00 : f32
    %36 = vector.broadcast %cst_17 : f32 to vector<1x32xf32>
    %37 = arith.addf %36, %4 : vector<1x32xf32>
    %38 = vector.broadcast %37 : vector<1x32xf32> to vector<8x32xf32>
    %39 = arith.mulf %35, %38 : vector<8x32xf32>
    %40 = vector.broadcast %3 : vector<1x32xf32> to vector<8x32xf32>
    %41 = arith.addf %39, %40 : vector<8x32xf32>
    %cst_18 = arith.constant 0.000000e+00 : f32
    %42 = vector.broadcast %cst_18 : f32 to vector<8x32xf32>
    %c0_19 = arith.constant 0 : index
    %c0_20 = arith.constant 0 : index
    %43 = vector.load %arg7[%c0_19, %c0_20] : memref<32x128xf32, #tpu.memory_space<vmem>>, vector<32x128xf32>
    %cst_21 = arith.constant dense<0.000000e+00> : vector<8x128xf32>
    %44 = tpu.matmul %41, %43, %cst_21 {dimension_numbers = #tpu.dot_dimension_numbers<[1], [0], [0], [1], [0, 0, 1, 1], [], []>} : vector<8x32xf32>, vector<32x128xf32>, vector<8x128xf32> -> vector<8x128xf32>
    %c0_22 = arith.constant 0 : index
    %c0_23 = arith.constant 0 : index
    %45 = vector.load %arg8[%c0_22, %c0_23] : memref<1x128xf32, #tpu.memory_space<vmem>>, vector<1x128xf32>
    %46 = vector.broadcast %45 : vector<1x128xf32> to vector<8x128xf32>
    %47 = arith.addf %44, %46 : vector<8x128xf32>
    %cst_24 = arith.constant 5.000000e-01 : f32
    %48 = vector.broadcast %cst_24 : f32 to vector<8x128xf32>
    %49 = arith.mulf %48, %47 : vector<8x128xf32>
    %cst_25 = arith.constant 4.471500e-02 : f32
    %50 = vector.broadcast %cst_25 : f32 to vector<8x128xf32>
    %51 = arith.mulf %50, %47 : vector<8x128xf32>
    %52 = arith.mulf %51, %47 : vector<8x128xf32>
    %53 = arith.mulf %52, %47 : vector<8x128xf32>
    %54 = arith.addf %47, %53 : vector<8x128xf32>
    %cst_26 = arith.constant 0.797884583 : f32
    %55 = vector.broadcast %cst_26 : f32 to vector<8x128xf32>
    %56 = arith.mulf %55, %54 : vector<8x128xf32>
    %57 = math.tanh %56 : vector<8x128xf32>
    %cst_27 = arith.constant 1.000000e+00 : f32
    %58 = vector.broadcast %cst_27 : f32 to vector<8x128xf32>
    %59 = arith.addf %58, %57 : vector<8x128xf32>
    %60 = arith.mulf %49, %59 : vector<8x128xf32>
    %c0_28 = arith.constant 0 : index
    %c0_29 = arith.constant 0 : index
    %61 = vector.load %arg9[%c0_28, %c0_29] : memref<128x32xf32, #tpu.memory_space<vmem>>, vector<128x32xf32>
    %cst_30 = arith.constant dense<0.000000e+00> : vector<8x32xf32>
    %62 = tpu.matmul %60, %61, %cst_30 {dimension_numbers = #tpu.dot_dimension_numbers<[1], [0], [0], [1], [0, 0, 1, 1], [], []>} : vector<8x128xf32>, vector<128x32xf32>, vector<8x32xf32> -> vector<8x32xf32>
    %63 = arith.addf %42, %62 : vector<8x32xf32>
    %c0_31 = arith.constant 0 : index
    %c0_32 = arith.constant 0 : index
    %64 = vector.load %arg10[%c0_31, %c0_32] : memref<1x32xf32, #tpu.memory_space<vmem>>, vector<1x32xf32>
    %65 = vector.broadcast %64 : vector<1x32xf32> to vector<8x32xf32>
    %66 = arith.addf %63, %65 : vector<8x32xf32>
    %67 = vector.broadcast %5 : vector<1x32xf32> to vector<8x32xf32>
    %68 = arith.mulf %67, %66 : vector<8x32xf32>
    %69 = arith.addf %17, %68 : vector<8x32xf32>
    %c0_33 = arith.constant 0 : index
    %c0_34 = arith.constant 0 : index
    %c0_35 = arith.constant 0 : index
    %70 = vector.load %arg11[%c0_33, %c0_34, %c0_35] : memref<1x8x32xf32, #tpu.memory_space<vmem>>, vector<1x8x32xf32>
    %71 = vector.shape_cast %70 : vector<1x8x32xf32> to vector<8x32xf32>
    %72 = vector.shape_cast %69 : vector<8x32xf32> to vector<1x8x32xf32>
    tpu.vector_store %arg11[%c0_33, %c0_34, %c0_35], %72 {strides = array<i32>} : memref<1x8x32xf32, #tpu.memory_space<vmem>>, vector<1x8x32xf32>,
    return
  }
  func.func @transform_0(%arg0: i32, %arg1: i32) -> (i32, i32, i32) {
    %c0_i32 = arith.constant 0 : i32
    %c0_i32_0 = arith.constant 0 : i32
    return %arg1, %arg0, %c0_i32 : i32, i32, i32
  }
  func.func @transform_1(%arg0: i32, %arg1: i32) -> (i32, i32, i32) {
    %c0_i32 = arith.constant 0 : i32
    %c0_i32_0 = arith.constant 0 : i32
    return %arg1, %arg0, %c0_i32 : i32, i32, i32
  }
  func.func @transform_2(%arg0: i32, %arg1: i32) -> (i32, i32, i32) {
    %c0_i32 = arith.constant 0 : i32
    %c0_i32_0 = arith.constant 0 : i32
    %c0_i32_1 = arith.constant 0 : i32
    return %arg1, %c0_i32, %c0_i32_0 : i32, i32, i32
  }
  func.func @transform_3(%arg0: i32, %arg1: i32) -> (i32, i32) {
    %c0_i32 = arith.constant 0 : i32
    %c0_i32_0 = arith.constant 0 : i32
    %c0_i32_1 = arith.constant 0 : i32
    return %c0_i32, %c0_i32_0 : i32, i32
  }
  func.func @transform_4(%arg0: i32, %arg1: i32) -> (i32, i32) {
    %c0_i32 = arith.constant 0 : i32
    %c0_i32_0 = arith.constant 0 : i32
    %c0_i32_1 = arith.constant 0 : i32
    return %c0_i32, %c0_i32_0 : i32, i32
  }
  func.func @transform_5(%arg0: i32, %arg1: i32) -> (i32, i32) {
    %c0_i32 = arith.constant 0 : i32
    %c0_i32_0 = arith.constant 0 : i32
    %c0_i32_1 = arith.constant 0 : i32
    return %c0_i32, %c0_i32_0 : i32, i32
  }
  func.func @transform_6(%arg0: i32, %arg1: i32) -> (i32, i32) {
    %c0_i32 = arith.constant 0 : i32
    %c0_i32_0 = arith.constant 0 : i32
    %c0_i32_1 = arith.constant 0 : i32
    return %c0_i32, %c0_i32_0 : i32, i32
  }
  func.func @transform_7(%arg0: i32, %arg1: i32) -> (i32, i32) {
    %c0_i32 = arith.constant 0 : i32
    %c0_i32_0 = arith.constant 0 : i32
    %c0_i32_1 = arith.constant 0 : i32
    return %c0_i32, %c0_i32_0 : i32, i32
  }
  func.func @transform_8(%arg0: i32, %arg1: i32) -> (i32, i32) {
    %c0_i32 = arith.constant 0 : i32
    %c0_i32_0 = arith.constant 0 : i32
    %c0_i32_1 = arith.constant 0 : i32
    return %c0_i32, %c0_i32_0 : i32, i32
  }
  func.func @transform_9(%arg0: i32, %arg1: i32) -> (i32, i32, i32) {
    %c0_i32 = arith.constant 0 : i32
    %c0_i32_0 = arith.constant 0 : i32
    return %arg1, %arg0, %c0_i32 : i32, i32, i32
  }
}

</mosaic_0001>

<bundles_post_ra>
// kernel: tpu_custom_call.1
= control target key start
LH: loop header
LB: loop body
LE: loop exit
PB: predicated region body
PF: predicated region fallthrough
CT: control target
= control target key end

     0   :  { %7 = vsyncpa [#allocation3], 0  ;;  %s651_s0 = inlined_call_operand.hbm [shape: f32[8,128], index: 0, kind: input, shape index: {}]   ;;  %s652_s1 = inlined_call_operand.hbm [shape: f32[16,128], index: 1, kind: input, shape index: {}]   ;;  %s653_s2 = inlined_call_operand.hbm [shape: f32[16,128], index: 2, kind: output, shape index: {}]  }
   0x1   :  { %8 = vsyncpa [#allocation6], 0 }
   0x2   :  { %10 = vsyncpa [#allocation6 + $0x1], 0 }
   0x3   :  { %11 = vsyncpa [#allocation4], 0 }
   0x4   :  { %13 = vsyncpa [#allocation4 + $0x1], 0  ;;  %s485_s9 = smov 0   ;;  %s487_s10 = smov 0  }
   0x5   :  { %s489_s11 = smov 0   ;;  %s491_s12 = smov 0  }
   0x6 LB: > { %s506_s13 = sadd.s32 4294967295, %s465_s12   ;;  %s272_s14 = sadd.s32 4294967294, %s465_s12   ;;  %s465_s12 = sphi %s491_s12, %s676_s12   ;;  %s461_s11 = sphi %s489_s11, %s675_s11   ;;  %s457_s10 = sphi %s487_s10, %s674_s10   ;;  %s453_s9 = sphi %s485_s9, %s673_s9  }
   0x7   : > { %p60_p0 = scmp.ne.s32.totalorder %s457_s10, %s453_s9  ;;  %p654_p1 = scmp.eq.s32.totalorder %s506_s13, 0 }
   0x8   : > { %p90_p3 = scmp.eq.s32.totalorder %s272_s14, 1  ;;  %p273_p5 = scmp.ge.s32.totalorder %s465_s12, 1 }
   0x9   : > { %p515_p4 = por %p654_p1, %p60_p0  ;;  %p97_p7 = scmp.lt.s32.totalorder %s465_s12, 3 }
   0xa   : > { %p520_p6 = por %p90_p3, %p60_p0  ;;  %s467_s18 = smov [#allocation2]  }
   0xb   : > { %s658_s15 = scalar_select %p515_p4, 1, 0 }
   0xc   : > { %s659_s16 = scalar_select %p520_p6, 1, 0 }
   0xd   : > { %p525_p8 = pnand %p273_p5, %p97_p7  ;;  %s110_s19 = sshll.u32 %s467_s18, 4  ;;  %s111_s19 = int_to_ptr.vmem [resolvable:$true] %s110_s19 }
   0xe   : > { %s533_s20 = sadd.s32 1, %s465_s12   ;;  %s47_s24 = sadd.s32 1, %s461_s11 }
   0xf   : > { %s660_s17 = scalar_select %p525_p8, 1, 0 }
  0x10   : > { %p294_p10 = pneg %p525_p8  ;;  %s44_s22 = ssub.s32 %s465_s12, %s533_s20 }
  0x11   : > { %p543_p12 = scmp.eq.s32.totalorder %s44_s22, 0  ;;  %p54_p13 = scmp.ne.s32.totalorder %s461_s11, %s457_s10 }
  0x12   : > { %p537_p11 = pnand %p294_p10, %p654_p1  ;;  %s354_s25 = scalar_lea.vmem %s111_s19, 128 }
  0x13   : > { %p355_p3 = scmp.ne.s32.totalorder %s111_s19, %s354_s25  ;;  %p362_p9 = scmp.lt.s32.totalorder %s111_s19, %s111_s19 }
  0x14   : > { %p345_p0 = pneg %p537_p11  ;;  %p363_p2 = scmp.lt.s32.totalorder %s354_s25, %s354_s25 }
  0x16   : > { %p357_p5 = pnand %p355_p3, %p345_p0  ;;  %p364_p10 = por %p363_p2, %p362_p9 }
  0x18   : > { %p358_p7 = pneg %p357_p5 }
  0x1a   : > { %p365_p1 = pnand %p364_p10, %p358_p7 }
  0x1c   : > { %368 = shalt.err (!%p365_p1)
}
  0x1d   : > { %297 = dma.hbm_to_vmem [thread:$0]  (!%p537_p11), %s651_s0, 128, %s111_s19, [#allocation3]  }
  0x1e   : > { %s560_s28 = scalar_select %p543_p12, %s461_s11, %s47_s24  }
  0x1f   : > { %p55_p1 = scmp.eq.s32.totalorder %s465_s12, 0  ;;  %p663_p2 = scmp.eq.s32.totalorder %s506_s13, 1 }
  0x20   : > { %p307_p0 = scmp.lt.s32.totalorder %s465_s12, 2  ;;  %s121_s30 = sand.u32 1, %s461_s11  }
  0x21   : > { %p568_p9 = por %p663_p2, %p54_p13  ;;  %p56_p3 = por %p55_p1, %p54_p13 }
  0x22   : > { %s276_s3 = sshll.u32 %s121_s30, 3  ;;  %s277_s4 = sshll.u32 %s465_s12, 7 }
  0x23   : > { %s664_s29 = scalar_select %p568_p9, 1, 0 }
  0x24   : > { %s581_s7 = scalar_lea.hbm %s652_s1, %s277_s4  ;;  %s125_s8 = scalar_lea.vmem [#allocation5], %s276_s3 }
  0x25   : > { %s132_s14 = sshll.u32 %s125_s8, 4  ;;  %p583_p11 = pnand %p307_p0, %p56_p3  ;;  %s133_s14 = int_to_ptr.vmem [resolvable:$true] %s132_s14 }
  0x26   : > { %s122_s19 = scalar_lea.sflag [#allocation6], %s121_s30  ;;  %s369_s21 = scalar_lea.hbm %s581_s7, 128 }
  0x27   : > { %p370_p12 = scmp.ne.s32.totalorder %s581_s7, %s369_s21  ;;  %p371_p13 = pneg %p583_p11 }
  0x28   : > { %s374_s24 = scalar_lea.hbm %s652_s1, 256  ;;  %p375_p10 = scmp.lt.s32.totalorder %s581_s7, %s652_s1 }
  0x29   : > { %p372_p5 = pnand %p371_p13, %p370_p12  ;;  %p376_p1 = scmp.lt.s32.totalorder %s374_s24, %s369_s21 }
  0x2b   : > { %p373_p7 = pneg %p372_p5  ;;  %p377_p2 = por %p376_p1, %p375_p10 }
  0x2d   : > { %p378_p0 = pnand %p377_p2, %p373_p7 }
  0x2f   : > { %381 = shalt.err (!%p378_p0)
}
  0x30   : > { %s382_s27 = scalar_lea.vmem %s133_s14, 128  ;;  %s468_s30 = smov [#allocation5]  }
  0x31   : > { %p383_p3 = scmp.ne.s32.totalorder %s133_s14, %s382_s27  ;;  %s387_s3 = sshll.u32 %s468_s30, 4  ;;  %s388_s3 = int_to_ptr.vmem [resolvable:$false] %s387_s3 }
  0x32   : > { %s389_s4 = scalar_lea.vmem %s388_s3, 256  ;;  %p390_p12 = scmp.lt.s32.totalorder %s133_s14, %s388_s3 }
  0x33   : > { %p385_p6 = pnand %p383_p3, %p371_p13  ;;  %p391_p5 = scmp.lt.s32.totalorder %s389_s4, %s382_s27 }
  0x35   : > { %p386_p9 = pneg %p385_p6  ;;  %p392_p4 = por %p391_p5, %p390_p12 }
  0x37   : > { %p393_p8 = pnand %p392_p4, %p386_p9 }
  0x39   : > { %396 = shalt.err (!%p393_p8)
}
  0x3a   : > { %301 = dma.hbm_to_vmem [thread:$0]  (!%p583_p11), %s581_s7, 128, %s133_s14, %s122_s19  }
  0x3b   : > { %p666_p7 = scmp.ne.s32.totalorder %s660_s17, 0 }
  0x3c   : > { %p667_p10 = scmp.eq.s32.totalorder (!%p666_p7), %s506_s13, 0 }
  0x3d   : > { %141 = sbr.rel (%p666_p7) target bundleno = 96 (0x60), region = 28 }
  0x42   : > { %440 = dma.done.wait (%p667_p10), [#allocation3], 128   ;;  %p668_p6 = pmov %p667_p10 }
  0x43   : > { %s608_s5 = sand.u32 1, %s457_s10   ;;  %p669_p4 = scmp.ne.s32.totalorder %s658_s15, 0 }
  0x44   : > { %442 = vsyncadd (%p668_p6), [#allocation3], 4294967168  ;;  %s280_s6 = sshll.u32 %s608_s5, 3  ;;  %s148_s8 = scalar_lea.sflag [#allocation6], %s608_s5 }
  0x45   : > { %s151_s18 = scalar_lea.vmem [#allocation5], %s280_s6 }
  0x46   : > { %444 = dma.done.wait (%p669_p4), %s148_s8, 128  }
  0x47   : > { %446 = vsyncadd (%p669_p4), %s148_s8, 4294967168  ;;  %s171_s17 = scalar_lea.vmem [#allocation7], %s280_s6  ;;  %s283_s14 = sshll.u32 %s506_s13, 7  ;;  %v172_v0 = vld [vmem:[%s151_s18] sm:$0xff]  ;;  %v173_v1 = vld [vmem:[#allocation2] sm:$0xff] }
  0x48   : > { %s190_s7 = sshll.u32 %s171_s17, 4  ;;  %v174_v2 = vadd.f32 %v173_v1, %v172_v0  ;;  %s188_s22 = scalar_lea.hbm %s653_s2, %s283_s14  ;;  %s191_s7 = int_to_ptr.vmem [resolvable:$true] %s190_s7 }
  0x49   : > { %s177_s23 = scalar_lea.sflag [#allocation4], %s608_s5  ;;  %s397_s24 = scalar_lea.vmem %s191_s7, 128 }
  0x4a   : > { %175 = vst [vmem:[%s171_s17] sm:$0xff] %v174_v2  ;;  %p398_p8 = scmp.ne.s32.totalorder %s191_s7, %s397_s24  ;;  %p670_p9 = scmp.ne.s32.totalorder %s664_s29, 0 }
  0x4b   : > { %s469_s15 = smov [#allocation7]  }
  0x4c   : > { %p399_p11 = pnand %p398_p8, %p670_p9  ;;  %s401_s25 = sshll.u32 %s469_s15, 4  ;;  %s402_s25 = int_to_ptr.vmem [resolvable:$false] %s401_s25 }
  0x4d   : > { %s403_s26 = scalar_lea.vmem %s402_s25, 256  ;;  %p404_p1 = scmp.lt.s32.totalorder %s191_s7, %s402_s25 }
  0x4e   : > { %p400_p13 = pneg %p399_p11  ;;  %p405_p2 = scmp.lt.s32.totalorder %s403_s26, %s397_s24 }
  0x50   : > { %p406_p0 = por %p405_p2, %p404_p1 }
  0x52   : > { %p407_p3 = pnand %p406_p0, %p400_p13 }
  0x54   : > { %410 = shalt.err (!%p407_p3)
}
  0x55   : > { %s411_s13 = scalar_lea.hbm %s188_s22, 128  ;;  %s415_s3 = scalar_lea.hbm %s653_s2, 256 }
  0x56   : > { %p412_p12 = scmp.ne.s32.totalorder %s188_s22, %s411_s13  ;;  %p416_p10 = scmp.lt.s32.totalorder %s188_s22, %s653_s2 }
  0x57   : > { %p417_p6 = scmp.lt.s32.totalorder %s415_s3, %s411_s13 }
  0x58   : > { %p413_p5 = pnand %p412_p12, %p670_p9 }
  0x59   : > { %p418_p4 = por %p417_p6, %p416_p10 }
  0x5a   : > { %p414_p7 = pneg %p413_p5 }
  0x5c   : > { %p419_p8 = pnand %p418_p4, %p414_p7 }
  0x5e   : > { %422 = shalt.err (!%p419_p8)
}
  0x5f   : > { %292 = dma.vmem_to_hbm [thread:$0]  (%p670_p9), %s191_s7, 128, %s188_s22, %s177_s23  }
  0x60 PF: > { %s202_s6 = sand.u32 1, %s453_s9   ;;  %p671_p11 = scmp.ne.s32.totalorder %s659_s16, 0 }
  0x61   : > { %p672_p13 = scmp.ge.s32.totalorder %s465_s12, 2  ;;  %s203_s8 = scalar_lea.sflag [#allocation4], %s202_s6 }
  0x63   : > { %p303_p1 = pnand %p672_p13, %p671_p11 }
  0x65   : > { %p304_p2 = pneg %p303_p1 }
  0x67   : > { %448 = dma.done.wait (%p304_p2), %s203_s8, 128  }
  0x68   : > { %450 = vsyncadd (%p304_p2), %s203_s8, 4294967168  ;;  %p16_p0 = scmp.ge.s32.totalorder %s533_s20, 4   ;;  %s673_s9 = smov %s457_s10 }
  0x69   : > { %s674_s10 = smov %s461_s11  ;;  %s675_s11 = smov %s560_s28 }
  0x6a   : > { %s676_s12 = smov %s533_s20  ;;  %18 = sbr.rel (!%p16_p0) target bundleno = 6 (0x6), region = 78 }
  0x6f   :  { %208 = vsyncpa [#allocation3], 1 }
  0x70   :  { %210 = vsyncpa [#allocation3 + $0x1], 1 }
  0x71   :  { %211 = vsyncpa [#allocation6], 1 }
  0x72   :  { %213 = vsyncpa [#allocation6 + $0x1], 1 }
  0x73   :  { %214 = vsyncpa [#allocation4], 1 }
  0x74   :  { %216 = vsyncpa [#allocation4 + $0x1], 1 }

// kernel: dit_block.3
= control target key start
LH: loop header
LB: loop body
LE: loop exit
PB: predicated region body
PF: predicated region fallthrough
CT: control target
= control target key end

     0   :  { %12 = vsyncpa [#allocation3], 0  ;;  %s1325_s21 = smov 0   ;;  %s1327_s22 = smov 0   ;;  %s1459_s0 = inlined_call_operand.vmem [shape: f32[2,8,32], index: 0, kind: input, shape index: {}]   ;;  %s1460_s1 = inlined_call_operand.vmem [shape: f32[2,6,32], index: 1, kind: input, shape index: {}]   ;;  %s1461_s2 = inlined_call_operand.hbm [shape: f32[32,1536], index: 2, kind: input, shape index: {}]   ;;  %s1462_s3 = inlined_call_operand.vmem [shape: f32[1,1536], index: 3, kind: input, shape index: {}]   ;;  %s1463_s4 = inlined_call_operand.vmem [shape: f32[2,8,512], index: 4, kind: output, shape index: {0}]   ;;  %s1464_s5 = inlined_call_operand.vmem [shape: f32[2,8,512], index: 5, kind: output, shape index: {1}]   ;;  %s1465_s6 = inlined_call_operand.vmem [shape: f32[2,8,512], index: 6, kind: output, shape index: {2}]  }
   0x1   :  { %s1329_s23 = smov 0  }
   0x2 LB: > { %s1164_s24 = sadd.s32 4294967295, %s1284_s23   ;;  %s27_s25 = sadd.s32 1, %s1280_s22  ;;  %s1284_s23 = sphi %s1329_s23, %s18_s23   ;;  %s1280_s22 = sphi %s1327_s22, %s1469_s22   ;;  %s1276_s21 = sphi %s1325_s21, %s1468_s21  }
   0x3   : > { %p28_p0 = scmp.ge.s32.totalorder %s27_s25, 2  ;;  %p1166_p1 = scmp.ge.s32.totalorder %s1284_s23, 1 }
   0x4   : > { %p215_p2 = scmp.lt.s32.totalorder %s1284_s23, 3  ;;  %p1350_p4 = scmp.eq.s32.totalorder %s1164_s24, 0 }
   0x5   : > { %s1471_s25 = smov (%p28_p0, %s27_s25), 0  ;;  %s1286_s28 = smov [#allocation2]  }
   0x6   : > { %p1346_p3 = pnand %p1166_p1, %p215_p2  ;;  %s227_s29 = sshll.u32 %s1286_s28, 4  ;;  %s228_s29 = int_to_ptr.vmem [resolvable:$true] %s227_s29 }
   0x7   : > { %s1243_s30 = scalar_lea.vmem %s228_s29, 6144  ;;  %p1251_p11 = scmp.lt.s32.totalorder %s228_s29, %s228_s29 }
   0x8   : > { %p1194_p5 = pneg %p1346_p3  ;;  %p1244_p8 = scmp.ne.s32.totalorder %s228_s29, %s1243_s30 }
   0x9   : > { %p1252_p12 = scmp.lt.s32.totalorder %s1243_s30, %s1243_s30 }
   0xa   : > { %p1195_p6 = pnand %p1350_p4, %p1194_p5 }
   0xb   : > { %p1253_p13 = por %p1252_p12, %p1251_p11 }
   0xc   : > { %p1234_p7 = pneg %p1195_p6 }
   0xe   : > { %p1246_p9 = pnand %p1244_p8, %p1234_p7 }
  0x10   : > { %p1247_p10 = pneg %p1246_p9 }
  0x12   : > { %p1254_p0 = pnand %p1253_p13, %p1247_p10 }
  0x14   : > { %1257 = shalt.err (!%p1254_p0)
}
  0x15   : > { %s1287_s7 = smov 1536   ;;  %s1288_s8 = smov 96  }
  0x16   : > { %1197 = dma.hbm_to_vmem [thread:$0]  (!%p1195_p6), %s1461_s2, 6144, %s228_s29, [#allocation3], %s1287_s7, %s1287_s7, %s1288_s8  }
  0x17   : > { %263 = sbr.rel (%p1346_p3) target bundleno = 578 (0x242), region = 36 }
  0x1c   : > { %1271 = dma.done.wait (%p1350_p4), [#allocation3], 6144  }
  0x1d   : > { %1273 = vsyncadd (%p1350_p4), [#allocation3], 4294961152  ;;  %p321_p1 = scmp.lt.s32.totalorder %s1276_s21, 1  ;;  %vm361_vm0 = vcmask 261120   ;;  %v431_v7 = vld [vmem:[#allocation2 + $0x128] sm:$0xff]  ;;  %v433_v8 = vld [vmem:[#allocation2 + $0x138] sm:$0xff]  ;;  %v384_v34 = vlaneseq }
  0x1e   : > { %v430_v9 = vld [vmem:[#allocation2 + $0x120] sm:$0xff]  ;;  %533 = vmatprep.subr.mxu0 %v431_v7  ;;  %604 = vmatprep.subr.mxu1 %v433_v8  ;;  %v432_v10 = vld [vmem:[#allocation2 + $0x130] sm:$0xff]  ;;  %v419_v11 = vld [vmem:[#allocation2 + $0xc8] sm:$0xff]  ;;  %v1289_v25 = vmov 0.0  }
  0x1f   : > { %s1473_s21 = smov (!%p321_p1, %s1276_s21), 1  ;;  %v421_v12 = vld [vmem:[#allocation2 + $0xd8] sm:$0xff]  ;;  %534 = vmatpush1.msra.mxu0 %v430_v9  ;;  %605 = vmatpush1.msra.mxu1 %v432_v10  ;;  %v418_v13 = vld [vmem:[#allocation2 + $0xc0] sm:$0xff]  ;;  %v420_v14 = vld [vmem:[#allocation2 + $0xd0] sm:$0xff]  ;;  %v1390_v35 = vshrl.u32 %v384_v34, 7 }
  0x20   : > { %s1171_s11 = sshll.u32 %s1473_s21, 3  ;;  %v407_v15 = vld [vmem:[#allocation2 + $0x68] sm:$0xff]  ;;  %535 = vmatprep.subr.mxu0 %v419_v11  ;;  %606 = vmatprep.subr.mxu1 %v421_v12  ;;  %v409_v16 = vld [vmem:[#allocation2 + $0x78] sm:$0xff]  ;;  %v406_v17 = vld [vmem:[#allocation2 + $0x60] sm:$0xff]  ;;  %s1425_s20 = sshll.u32 %s1473_s21, 5 }
  0x21   : > { %s327_s14 = scalar_lea.vmem %s1459_s0, %s1171_s11  ;;  %v408_v18 = vld [vmem:[#allocation2 + $0x70] sm:$0xff]  ;;  %536 = vmatpush1.msra.mxu0 %v418_v13  ;;  %607 = vmatpush1.msra.mxu1 %v420_v14  ;;  %v395_v19 = vld [vmem:[#allocation2 + $0x8] sm:$0xff]  ;;  %v397_v20 = vld [vmem:[#allocation2 + $0x18] sm:$0xff]  ;;  %s331_s17 = scalar_lea.vmem %s1460_s1, %s1171_s11  ;;  %v1393_v38 = vsub.s32 1, %v1390_v35  ;;  %v1396_v39 = vsub.s32 0, %v1390_v35  ;;  %v456_v12 = vsub.s32 2, %v1390_v35 }
  0x22   : > { %v359_v0 = vld [vmem:[%s327_s14] sm:$0xff]  ;;  %537 = vmatprep.subr.mxu0 %v407_v15  ;;  %608 = vmatprep.subr.mxu1 %v409_v16  ;;  %v396_v22 = vld [vmem:[#allocation2 + $0x10] sm:$0xff]  ;;  %v435_v23 = vld [vmem:[#allocation2 + $0x148] sm:$0xff]  ;;  %v460_v14 = vsub.s32 3, %v1390_v35  ;;  %s340_s27 = scalar_lea.vmem %s1463_s4, %s1425_s20  ;;  %s349_s29 = scalar_lea.vmem %s1464_s5, %s1425_s20 }
  0x23   : > { %v362_v1 = vsel %vm361_vm0, %v359_v0, 0.0  ;;  %v394_v21 = vld [vmem:[#allocation2] sm:$0xff]  ;;  %538 = vmatpush1.msra.mxu0 %v406_v17  ;;  %609 = vmatpush1.msra.mxu1 %v408_v18  ;;  %v437_v24 = vld [vmem:[#allocation2 + $0x158] sm:$0xff]  ;;  %v436_v47 = vld [vmem:[#allocation2 + $0x150] sm:$0xff]  ;;  %s358_s10 = scalar_lea.vmem %s1465_s6, %s1425_s20 }
  0x24   : > { %363 = vadd.xlane.f32.xlu0 %v362_v1  ;;  %539 = vmatprep.subr.mxu0 %v395_v19  ;;  %v360_v36 = vld [vmem:[%s331_s17] sm:$0x3f]  ;;  %v423_v48 = vld [vmem:[#allocation2 + $0xe8] sm:$0xff]  ;;  %v425_v49 = vld [vmem:[#allocation2 + $0xf8] sm:$0xff] }
  0x25   : > { %610 = vmatprep.subr.mxu1 %v397_v20  ;;  %540 = vmatpush1.msra.mxu0 %v394_v21  ;;  %v383_v37 = vadd.f32 1.0, %v360_v36  ;;  %v392_v42 = vrot.slane %v360_v36, %v1396_v39  ;;  %v434_v46 = vld [vmem:[#allocation2 + $0x140] sm:$0xff]  ;;  %v424_v51 = vld [vmem:[#allocation2 + $0xf0] sm:$0xff]  ;;  %v411_v52 = vld [vmem:[#allocation2 + $0x88] sm:$0xff] }
  0x26   : > { %611 = vmatpush1.msra.mxu1 %v396_v22  ;;  %573 = vmatprep.mubr.f32.mxu0 %v1289_v25  ;;  %v422_v50 = vld [vmem:[#allocation2 + $0xe0] sm:$0xff]  ;;  %v413_v53 = vld [vmem:[#allocation2 + $0x98] sm:$0xff]  ;;  %v412_v55 = vld [vmem:[#allocation2 + $0x90] sm:$0xff] }
  0x27   : > { %644 = vmatprep.mubr.f32.mxu1 %v1289_v25  ;;  %675 = vmatprep.subr.mxu0 %v435_v23  ;;  %v387_v40 = vrot.slane %v383_v37, %v1393_v38  ;;  %v410_v54 = vld [vmem:[#allocation2 + $0x80] sm:$0xff]  ;;  %v399_v56 = vld [vmem:[#allocation2 + $0x28] sm:$0xff]  ;;  %v401_v57 = vld [vmem:[#allocation2 + $0x38] sm:$0xff] }
  0x28   : > { %746 = vmatprep.subr.mxu1 %v437_v24  ;;  %v398_v58 = vld [vmem:[#allocation2 + $0x20] sm:$0xff]  ;;  %v400_v59 = vld [vmem:[#allocation2 + $0x30] sm:$0xff]  ;;  %v439_v60 = vld [vmem:[#allocation2 + $0x168] sm:$0xff] }
  0x29   : > { %v441_v61 = vld [vmem:[#allocation2 + $0x178] sm:$0xff]  ;;  %v438_v62 = vld [vmem:[#allocation2 + $0x160] sm:$0xff]  ;;  %v440_v63 = vld [vmem:[#allocation2 + $0x170] sm:$0xff] }
  0x2a   : > { %v429_v1 = vld [vmem:[#allocation2 + $0x118] sm:$0xff]  ;;  %v416_v7 = vld [vmem:[#allocation2 + $0xb0] sm:$0xff]  ;;  %v403_v8 = vld [vmem:[#allocation2 + $0x48] sm:$0xff] }
  0x2b   : > { %v405_v9 = vld [vmem:[#allocation2 + $0x58] sm:$0xff]  ;;  %v402_v10 = vld [vmem:[#allocation2 + $0x40] sm:$0xff]  ;;  %v404_v11 = vld [vmem:[#allocation2 + $0x50] sm:$0xff] }
  0x2c   : > { %v442_v13 = vld [vmem:[%s1462_s3] sm:$0xff] }
  0x2d   : > { %v449_v15 = vrot.slane %v442_v13, %v1396_v39  ;;  %v457_v16 = vrot.slane %v442_v13, %v456_v12  ;;  %v453_v17 = vrot.slane %v442_v13, %v1393_v38  ;;  %v461_v18 = vrot.slane %v442_v13, %v460_v14 }
  0xad   : > { %v364_v2 = vpop.xlane.xlu0 %363 }
  0xae   : > { %v366_v3 = vmul.f32 0.03125, %v364_v2  ;;  %v426_v2 = vld [vmem:[#allocation2 + $0x100] sm:$0xff] }
  0xb0   : > { %v1378_v4 = vsub.f32 %v359_v0, %v366_v3  ;;  %v427_v0 = vld [vmem:[#allocation2 + $0x108] sm:$0xff]  ;;  %v428_v3 = vld [vmem:[#allocation2 + $0x110] sm:$0xff] }
  0xb2   : > { %v368_v5 = vmul.f32 %v1378_v4, %v1378_v4 }
  0xb4   : > { %v369_v6 = vsel %vm361_vm0, %v368_v5, 0.0  ;;  %v417_v5 = vld [vmem:[#allocation2 + $0xb8] sm:$0xff] }
  0xb5   : > { %370 = vadd.xlane.f32.xlu0 %v369_v6  ;;  %v414_v6 = vld [vmem:[#allocation2 + $0xa0] sm:$0xff] }
 0x13e   : > { %v371_v26 = vpop.xlane.xlu0 %370 }
 0x13f   : > { %v372_v27 = vmul.f32 0.03125, %v371_v26  ;;  %v472_v26 = vsub.s32 6, %v1390_v35 }
 0x141   : > { %v373_v28 = vadd.f32 1e-06, %v372_v27 }
 0x143   : > { %1228 = vrsqrt.f32 %v373_v28  ;;  %vm376_vm1 = vcmp.eq.f32.partialorder %v373_v28, inf  ;;  %v379_v31 = vand.u32 2147483648, %v373_v28  ;;  %vm378_vm2 = vcmp.eq.f32.partialorder %v373_v28, 0.0 }
 0x150   : > { %v1229_v29 = vpop.eup %1228 }
 0x151   : > { %v375_v30 = vmul.f32 %v1229_v29, %v373_v28  ;;  %v468_v29 = vsub.s32 5, %v1390_v35 }
 0x153   : > { %v377_v32 = vsel %vm376_vm1, %v373_v28, %v375_v30  ;;  %v476_v30 = vsub.s32 7, %v1390_v35 }
 0x154   : > { %v380_v33 = vsel %vm378_vm2, %v379_v31, %v377_v32  ;;  %v473_v32 = vrot.slane %v442_v13, %v472_v26 }
 0x155   : > { %1230 = vrcp.f32 %v380_v33  ;;  %v469_v33 = vrot.slane %v442_v13, %v468_v29  ;;  %v477_v34 = vrot.slane %v442_v13, %v476_v30 }
 0x162   : > { %v1231_v41 = vpop.eup %1230 }
 0x163   : > { %v382_v43 = vmul.f32 %v1231_v41, %v1378_v4  ;;  %v415_v4 = vld [vmem:[#allocation2 + $0xa8] sm:$0xff] }
 0x165   : > { %v388_v44 = vmul.f32 %v387_v40, %v382_v43 }
 0x167   : > { %v1401_v45 = vadd.f32 %v392_v42, %v388_v44 }
 0x169   : > { %1179 = vmatmul.mubr.msk.f32.vlgmr.msra.gmra.mxu0 %vm361_vm0, %v1401_v45  ;;  %1180 = vmatmul.mubr.msk.f32.vlgmr.msra.gmra.mxu1 %vm361_vm0, %v1401_v45 }
 0x16a   : > { %676 = vmatpush1.msra.mxu0 %v434_v46  ;;  %747 = vmatpush1.msra.mxu1 %v436_v47 }
 0x16b   : > { %677 = vmatprep.subr.mxu0 %v423_v48  ;;  %748 = vmatprep.subr.mxu1 %v425_v49 }
 0x16c   : > { %678 = vmatpush1.msra.mxu0 %v422_v50  ;;  %749 = vmatpush1.msra.mxu1 %v424_v51 }
 0x16d   : > { %679 = vmatprep.subr.mxu0 %v411_v52  ;;  %750 = vmatprep.subr.mxu1 %v413_v53 }
 0x16e   : > { %680 = vmatpush1.msra.mxu0 %v410_v54  ;;  %751 = vmatpush1.msra.mxu1 %v412_v55 }
 0x16f   : > { %681 = vmatprep.subr.mxu0 %v399_v56  ;;  %752 = vmatprep.subr.mxu1 %v401_v57 }
 0x170   : > { %682 = vmatpush1.msra.mxu0 %v398_v58  ;;  %715 = vmatprep.mubr.f32.mxu0 %v1289_v25 }
 0x171   : > { %753 = vmatpush1.msra.mxu1 %v400_v59  ;;  %786 = vmatprep.mubr.f32.mxu1 %v1289_v25 }
 0x172   : > { %1181 = vmatmul.mubr.msk.f32.vlgmr.msra.gmra.mxu0 %vm361_vm0, %v1401_v45  ;;  %1182 = vmatmul.mubr.msk.f32.vlgmr.msra.gmra.mxu1 %vm361_vm0, %v1401_v45 }
 0x173   : > { %817 = vmatprep.subr.mxu0 %v439_v60  ;;  %888 = vmatprep.subr.mxu1 %v441_v61 }
 0x174   : > { %818 = vmatpush1.msra.mxu0 %v438_v62  ;;  %889 = vmatpush1.msra.mxu1 %v440_v63 }
 0x175   : > { %819 = vmatprep.subr.mxu0 %v427_v0  ;;  %890 = vmatprep.subr.mxu1 %v429_v1 }
 0x176   : > { %820 = vmatpush1.msra.mxu0 %v426_v2  ;;  %891 = vmatpush1.msra.mxu1 %v428_v3 }
 0x177   : > { %821 = vmatprep.subr.mxu0 %v415_v4  ;;  %892 = vmatprep.subr.mxu1 %v417_v5 }
 0x178   : > { %822 = vmatpush1.msra.mxu0 %v414_v6  ;;  %893 = vmatpush1.msra.mxu1 %v416_v7 }
 0x179   : > { %823 = vmatprep.subr.mxu0 %v403_v8  ;;  %894 = vmatprep.subr.mxu1 %v405_v9 }
 0x17a   : > { %824 = vmatpush1.msra.mxu0 %v402_v10  ;;  %857 = vmatprep.mubr.f32.mxu0 %v1289_v25 }
 0x17b   : > { %895 = vmatpush1.msra.mxu1 %v404_v11  ;;  %928 = vmatprep.mubr.f32.mxu1 %v1289_v25  ;;  %v464_v25 = vsub.s32 4, %v1390_v35 }
 0x17c   : > { %1183 = vmatmul.mubr.msk.f32.vlgmr.msra.gmra.mxu0 %vm361_vm0, %v1401_v45  ;;  %1184 = vmatmul.mubr.msk.f32.vlgmr.msra.gmra.mxu1 %vm361_vm0, %v1401_v45  ;;  %v443_v45 = vld [vmem:[%s1462_s3 + $0x8] sm:$0xf] }
 0x17d   : > { %v465_v31 = vrot.slane %v442_v13, %v464_v25  ;;  %v481_v46 = vrot.slane %v443_v45, %v1396_v39  ;;  %v489_v47 = vrot.slane %v443_v45, %v456_v12  ;;  %v485_v48 = vrot.slane %v443_v45, %v1393_v38 }
 0x17e   : > { %v493_v49 = vrot.slane %v443_v45, %v460_v14 }
 0x229   : > { %v575_v19 = vpop.f32.mrf.mxu0  ;;  %v646_v20 = vpop.f32.mrf.mxu1 }
 0x22a   : > { %v576_v21 = vadd.f32 %v575_v19, %v449_v15  ;;  %v647_v22 = vadd.f32 %v646_v20, %v457_v16 }
 0x22b   : > { %v577_v23 = vpop.f32.mrf.mxu0  ;;  %v648_v24 = vpop.f32.mrf.mxu1 }
 0x22c   : > { %935 = vst [vmem:[%s340_s27] sm:$0xff] %v576_v21  ;;  %937 = vst [vmem:[%s340_s27 + $0x10] sm:$0xff] %v647_v22  ;;  %v578_v27 = vadd.f32 %v577_v23, %v453_v17  ;;  %v649_v28 = vadd.f32 %v648_v24, %v461_v18 }
 0x22e   : > { %936 = vst [vmem:[%s340_s27 + $0x8] sm:$0xff] %v578_v27  ;;  %938 = vst [vmem:[%s340_s27 + $0x18] sm:$0xff] %v649_v28 }
 0x232   : > { %v717_v36 = vpop.f32.mrf.mxu0  ;;  %v788_v37 = vpop.f32.mrf.mxu1 }
 0x233   : > { %v718_v40 = vadd.f32 %v717_v36, %v465_v31  ;;  %v789_v41 = vadd.f32 %v788_v37, %v473_v32 }
 0x234   : > { %v719_v42 = vpop.f32.mrf.mxu0  ;;  %v790_v43 = vpop.f32.mrf.mxu1 }
 0x235   : > { %939 = vst [vmem:[%s349_s29] sm:$0xff] %v718_v40  ;;  %941 = vst [vmem:[%s349_s29 + $0x10] sm:$0xff] %v789_v41  ;;  %v720_v35 = vadd.f32 %v719_v42, %v469_v33  ;;  %v791_v44 = vadd.f32 %v790_v43, %v477_v34 }
 0x237   : > { %940 = vst [vmem:[%s349_s29 + $0x8] sm:$0xff] %v720_v35  ;;  %942 = vst [vmem:[%s349_s29 + $0x18] sm:$0xff] %v791_v44 }
 0x23c   : > { %v859_v50 = vpop.f32.mrf.mxu0  ;;  %v930_v51 = vpop.f32.mrf.mxu1 }
 0x23d   : > { %v860_v52 = vadd.f32 %v859_v50, %v481_v46  ;;  %v931_v53 = vadd.f32 %v930_v51, %v489_v47 }
 0x23e   : > { %v861_v54 = vpop.f32.mrf.mxu0  ;;  %v932_v55 = vpop.f32.mrf.mxu1 }
 0x23f   : > { %943 = vst [vmem:[%s358_s10] sm:$0xff] %v860_v52  ;;  %945 = vst [vmem:[%s358_s10 + $0x10] sm:$0xff] %v931_v53  ;;  %v862_v56 = vadd.f32 %v861_v54, %v485_v48  ;;  %v933_v57 = vadd.f32 %v932_v55, %v493_v49 }
 0x241   : > { %944 = vst [vmem:[%s358_s10 + $0x8] sm:$0xff] %v862_v56  ;;  %946 = vst [vmem:[%s358_s10 + $0x18] sm:$0xff] %v933_v57 }
 0x242 PF: > { %s18_s23 = sadd.s32 1, %s1284_s23   ;;  %s1468_s21 = smov %s1280_s22 }
 0x243   : > { %p15_p2 = scmp.ge.s32.totalorder %s18_s23, 4   ;;  %s1469_s22 = smov %s1471_s25 }
 0x245   :  { %17 = sbr.rel (!%p15_p2) target bundleno = 2 (0x2), region = 98 }
 0x24a   :  { %1024 = vsyncpa [#allocation3], 1 }
 0x24b   :  { %1026 = vsyncpa [#allocation3 + $0x1], 1 }

// kernel: dit_block.4
= control target key start
LH: loop header
LB: loop body
LE: loop exit
PB: predicated region body
PF: predicated region fallthrough
CT: control target
= control target key end

     0   :  { %s747_s12 = smov 0   ;;  %s749_s13 = smov 0   ;;  %s810_s0 = inlined_call_operand.vmem [shape: f32[2,8,512], index: 0, kind: input, shape index: {}]   ;;  %s811_s1 = inlined_call_operand.vmem [shape: f32[2,8,512], index: 1, kind: input, shape index: {}]   ;;  %s812_s2 = inlined_call_operand.vmem [shape: f32[2,8,512], index: 2, kind: input, shape index: {}]   ;;  %s813_s3 = inlined_call_operand.vmem [shape: f32[2,8,512], index: 3, kind: output, shape index: {}]  }
   0x1   :  { %s751_s14 = smov 0   ;;  %s753_s15 = smov 0  }
   0x2   :  { %s755_s16 = smov 0  }
   0x3 LB: > { %s28_s17 = sadd.s32 1, %s715_s14  ;;  %s32_s18 = sadd.s32 1, %s719_s15  ;;  %s723_s16 = sphi %s755_s16, %s13_s16   ;;  %s719_s15 = sphi %s753_s15, %s817_s15   ;;  %s715_s14 = sphi %s751_s14, %s816_s14   ;;  %s711_s13 = sphi %s749_s13, %s815_s13   ;;  %s707_s12 = sphi %s747_s12, %s814_s12  }
   0x4   : > { %p30_p0 = scmp.ge.s32.totalorder %s28_s17, 4  ;;  %p611_p1 = scmp.ge.s32.totalorder %s723_s16, 1 }
   0x5   : > { %p201_p2 = scmp.lt.s32.totalorder %s723_s16, 9 }
   0x6   : > { %s819_s17 = smov (%p30_p0, %s28_s17), 0  ;;  %s821_s18 = smov (!%p30_p0, %s32_s18), %s719_s15 }
   0x7   : > { %p202_p3 = pnand %p611_p1, %p201_p2  ;;  %p34_p4 = scmp.ge.s32.totalorder %s821_s18, 2 }
   0x8   : > { %p255_p5 = scmp.lt.s32.totalorder (!%p202_p3), %s711_s13, 1  ;;  %p259_p6 = scmp.lt.s32.totalorder (!%p202_p3), %s707_s12, 3 }
   0x9   : > { %s823_s18 = smov (%p34_p4, %s821_s18), 0  ;;  %205 = sbr.rel (%p202_p3) target bundleno = 571 (0x23b), region = 32 }
   0xe   : > { %v725_v0 = vmov 0.0   ;;  %vm726_vm0 = vmmov 0   ;;  %s825_s13 = smov (!%p255_p5, %s711_s13), 1  ;;  %s827_s12 = smov (!%p259_p6, %s707_s12), 3  ;;  %vm368_vm1 = vcmask 64512  }
   0xf   : > { %627 = vmatprep.subr.mxu0 %v725_v0  ;;  %629 = vmatprep.mubr.msk.f32.mxu0 %vm726_vm0, %v725_v0  ;;  %s612_s19 = sshll.u32 %s825_s13, 2 }
  0x10   : > { %632 = vmatprep.subr.mxu1 %v725_v0  ;;  %634 = vmatprep.mubr.msk.f32.mxu1 %vm726_vm0, %v725_v0  ;;  %s264_s20 = sadd.s32 %s612_s19, %s827_s12 }
  0x11   : > { %s777_s21 = sshll.u32 %s264_s20, 3 }
  0x12   : > { %s274_s24 = scalar_lea.vmem %s811_s1, %s777_s21  ;;  %s266_s27 = scalar_lea.vmem %s810_s0, %s777_s21 }
  0x13   : > { %v296_v1 = vld [vmem:[%s274_s24] sm:$0xff]  ;;  %s282_s30 = scalar_lea.vmem %s812_s2, %s777_s21  ;;  %s294_s6 = scalar_lea.vmem %s813_s3, %s777_s21 }
  0x14   : > { %628 = vmatpush3.xpose.msra.mxu0 %v296_v1  ;;  %v295_v2 = vld [vmem:[%s266_s27] sm:$0xff] }
  0x15   : > { %v297_v6 = vld [vmem:[%s282_s30] sm:$0xff] }
  0x16   : > { %633 = vmatpush3.msra.mxu1 %v297_v6 }
  0x17   : > { %630 = vmatmul.mubr.f32.vlgmr.msra.gmra.mxu0 %v295_v2 }
  0xd7   : > { %v364_v3 = vpop.f32.mrf.mxu0 }
  0xd8   : > { %v369_v4 = vsel %vm368_vm1, %v364_v3, -inf }
  0xd9   : > { %370 = vmax.xlane.f32.xlu0 %v369_v4  ;;  %v631_v5 = vpop.f32.mrf.mxu0 }
 0x162   : > { %v371_v7 = vpop.xlane.xlu0 %370 }
 0x163   : > { %v375_v8 = vsub.f32 %v364_v3, %v371_v7  ;;  %v372_v12 = vsub.f32 -inf, %v371_v7 }
 0x165   : > { %v376_v9 = vmul.f32 1.442695, %v375_v8  ;;  %v373_v13 = vmul.f32 1.442695, %v372_v12 }
 0x167   : > { %679 = vpow2.f32 %v376_v9 }
 0x168   : > { %681 = vpow2.f32 %v373_v13 }
 0x174   : > { %v680_v10 = vpop.eup %679 }
 0x175   : > { %635 = vmatmul.mubr.msk.f32.vlgmr.msra.gmra.mxu1 %vm368_vm1, %v680_v10  ;;  %v379_v11 = vsel %vm368_vm1, %v680_v10, 0.0  ;;  %v682_v14 = vpop.eup %681 }
 0x176   : > { %380 = vadd.xlane.f32.xlu0 %v379_v11  ;;  %v378_v16 = vmul.f32 0.0, %v682_v14 }
 0x1ff   : > { %v381_v15 = vpop.xlane.xlu0 %380 }
 0x200   : > { %v382_v17 = vadd.f32 %v381_v15, %v378_v16 }
 0x202   : > { %683 = vrcp.f32 %v382_v17 }
 0x20f   : > { %v684_v20 = vpop.eup %683 }
 0x235   : > { %v452_v18 = vpop.f32.mrf.mxu1 }
 0x236   : > { %v456_v19 = vadd.f32 %v452_v18, %v378_v16 }
 0x237   : > { %v636_v21 = vpop.f32.mrf.mxu1 }
 0x238   : > { %v458_v22 = vmul.f32 %v684_v20, %v456_v19 }
 0x23a   : > { %459 = vst [vmem:[%s294_s6] sm:$0xff] %v458_v22 }
 0x23b PF: > { %s13_s16 = sadd.s32 1, %s723_s16   ;;  %s814_s12 = smov %s715_s14 }
 0x23c   : > { %p10_p7 = scmp.ge.s32.totalorder %s13_s16, 10   ;;  %s815_s13 = smov %s719_s15 }
 0x23d   : > { %s816_s14 = smov %s819_s17  ;;  %s817_s15 = smov %s823_s18 }
 0x23e   :  { %12 = sbr.rel (!%p10_p7) target bundleno = 3 (0x3), region = 68 }

// kernel: dit_block.5
= control target key start
LH: loop header
LB: loop body
LE: loop exit
PB: predicated region body
PF: predicated region fallthrough
CT: control target
= control target key end

     0   :  { %14 = vsyncpa [#allocation3], 0  ;;  %s1738_s0 = inlined_call_operand.vmem [shape: f32[2,8,512], index: 0, kind: input, shape index: {}]   ;;  %s1739_s1 = inlined_call_operand.vmem [shape: f32[2,8,32], index: 1, kind: input, shape index: {}]   ;;  %s1740_s2 = inlined_call_operand.vmem [shape: f32[2,6,32], index: 2, kind: input, shape index: {}]   ;;  %s1741_s3 = inlined_call_operand.vmem [shape: f32[512,32], index: 3, kind: input, shape index: {}]   ;;  %s1742_s4 = inlined_call_operand.vmem [shape: f32[1,32], index: 4, kind: input, shape index: {}]   ;;  %s1743_s5 = inlined_call_operand.vmem [shape: f32[32,128], index: 5, kind: input, shape index: {}]   ;;  %s1744_s6 = inlined_call_operand.vmem [shape: f32[1,128], index: 6, kind: input, shape index: {}]   ;;  %s1745_s7 = inlined_call_operand.vmem [shape: f32[128,32], index: 7, kind: input, shape index: {}]   ;;  %s1746_s8 = inlined_call_operand.vmem [shape: f32[1,32], index: 8, kind: input, shape index: {}]   ;;  %s1747_s9 = inlined_call_operand.hbm [shape: f32[2,8,32], index: 9, kind: output, shape index: {}]  }
   0x1   :  { %16 = vsyncpa [#allocation3 + $0x1], 0  ;;  %s1323_s30 = smov 0   ;;  %s1325_s10 = smov 0  }
   0x2   :  { %s1327_s11 = smov 0   ;;  %s1329_s12 = smov 0  }
   0x3   :  { %s1331_s13 = smov 0   ;;  %s1333_s14 = smov 0  }
   0x4 LB: > { %1750 = sst [smem:[#allocation5_spill]] %s1264_s13  ;;  %s972_s15 = sadd.s32 4294967295, %s1268_s14   ;;  %s1268_s14 = sphi %s1333_s14, %s22_s14   ;;  %s1264_s13 = sphi %s1331_s13, %s1755_s13   ;;  %s1260_s12 = sphi %s1329_s12, %s1754_s12   ;;  %s1256_s11 = sphi %s1327_s11, %s1758_s11   ;;  %s1252_s10 = sphi %s1325_s10, %s1757_s10   ;;  %s1248_s30 = sphi %s1323_s30, %s1756_s30  }
   0x5   : > { %s973_s16 = sadd.s32 4294967294, %s1268_s14   ;;  %s31_s17 = sadd.s32 1, %s1264_s13 }
   0x6   : > { %s251_s18 = sadd.s32 1, %s1256_s11  ;;  %p32_p0 = scmp.ge.s32.totalorder %s31_s17, 2 }
   0x7   : > { %p261_p1 = scmp.ne.s32.totalorder %s1256_s11, %s1252_s10  ;;  %p262_p2 = scmp.eq.s32.totalorder %s972_s15, 1 }
   0x8   : > { %p267_p3 = scmp.ne.s32.totalorder %s1252_s10, %s1248_s30  ;;  %s1760_s17 = smov (%p32_p0, %s31_s17), 0 }
   0x9   : > { %1751 = sst [smem:[#allocation6_spill]] %s1760_s17  ;;  %p1363_p4 = por %p262_p2, %p261_p1 }
   0xa   : > { %p268_p5 = scmp.eq.s32.totalorder %s973_s16, 1  ;;  %s246_s20 = ssub.s32 %s1264_s13, %s1760_s17 }
   0xb   : > { %p976_p6 = scmp.ge.s32.totalorder %s1268_s14, 1  ;;  %p249_p7 = scmp.eq.s32.totalorder %s246_s20, 0 }
   0xc   : > { %p1370_p8 = por %p268_p5, %p267_p3  ;;  %p333_p9 = scmp.lt.s32.totalorder %s1268_s14, 3 }
   0xd   : > { %s1376_s22 = scalar_select %p249_p7, %s1256_s11, %s251_s18  }
   0xe   : > { %p334_p10 = pnand %p976_p6, %p333_p9 }
   0xf   : > { %p384_p11 = scmp.lt.s32.totalorder (!%p334_p10), %s1260_s12, 1  ;;  %s381_s25 = sand.u32 (!%p334_p10), 1, %s1252_s10  }
  0x10   : > { %337 = sbr.rel (%p334_p10) target bundleno = 1022 (0x3fe), region = 56  ;;  %s1272_s24 = smov (!%p334_p10), [#allocation2]  }
  0x15   : > { %v440_v0 = vld [vmem:[%s1741_s3 + $0xf8] sm:$0xff]  ;;  %v439_v4 = vld [vmem:[%s1741_s3 + $0xf0] sm:$0xff]  ;;  %v438_v8 = vld [vmem:[%s1741_s3 + $0xe8] sm:$0xff]  ;;  %s1514_s23 = scalar_select %p384_p11, %s1260_s12, 1  ;;  %vm627_vm0 = vcmask 261120   ;;  %vm1271_vm1 = vmmov 0  }
  0x16   : > { %v472_v1 = vld [vmem:[%s1741_s3 + $0x1f8] sm:$0xff]  ;;  %991 = vmatprep.subr.mxu0 %v440_v0  ;;  %v471_v5 = vld [vmem:[%s1741_s3 + $0x1f0] sm:$0xff]  ;;  %v470_v9 = vld [vmem:[%s1741_s3 + $0x1e8] sm:$0xff] }
  0x17   : > { %v424_v2 = vld [vmem:[%s1741_s3 + $0x78] sm:$0xff]  ;;  %1026 = vmatprep.subr.mxu1 %v472_v1  ;;  %v423_v6 = vld [vmem:[%s1741_s3 + $0x70] sm:$0xff]  ;;  %v422_v10 = vld [vmem:[%s1741_s3 + $0x68] sm:$0xff]  ;;  %s990_s15 = sshll.u32 %s1514_s23, 5  ;;  %s980_s26 = sshll.u32 %s1514_s23, 3 }
  0x18   : > { %v456_v3 = vld [vmem:[%s1741_s3 + $0x178] sm:$0xff]  ;;  %992 = vmatpush3.msra.mxu0 %v424_v2  ;;  %v455_v7 = vld [vmem:[%s1741_s3 + $0x170] sm:$0xff]  ;;  %v454_v11 = vld [vmem:[%s1741_s3 + $0x168] sm:$0xff]  ;;  %s392_s13 = scalar_lea.vmem %s1738_s0, %s990_s15  ;;  %s403_s17 = scalar_lea.vmem %s1740_s2, %s980_s26 }
  0x19   : > { %1027 = vmatpush3.msra.mxu1 %v456_v3  ;;  %993 = vmatprep.subr.mxu0 %v439_v4  ;;  %v437_v12 = vld [vmem:[%s1741_s3 + $0xe0] sm:$0xff]  ;;  %v436_v16 = vld [vmem:[%s1741_s3 + $0xd8] sm:$0xff]  ;;  %v435_v20 = vld [vmem:[%s1741_s3 + $0xd0] sm:$0xff]  ;;  %v621_v4 = vlaneseq  ;;  %s399_s18 = scalar_lea.vmem %s1739_s1, %s980_s26  ;;  %s977_s26 = sshll.u32 %s381_s25, 3 }
  0x1a   : > { %1028 = vmatprep.subr.mxu1 %v471_v5  ;;  %994 = vmatpush3.msra.mxu0 %v423_v6  ;;  %v469_v13 = vld [vmem:[%s1741_s3 + $0x1e0] sm:$0xff]  ;;  %v468_v17 = vld [vmem:[%s1741_s3 + $0x1d8] sm:$0xff]  ;;  %v467_v21 = vld [vmem:[%s1741_s3 + $0x1d0] sm:$0xff]  ;;  %s854_s15 = scalar_lea.sflag [#allocation3], %s381_s25 }
  0x1b   : > { %1029 = vmatpush3.msra.mxu1 %v455_v7  ;;  %995 = vmatprep.subr.mxu0 %v438_v8  ;;  %v421_v14 = vld [vmem:[%s1741_s3 + $0x60] sm:$0xff]  ;;  %v420_v18 = vld [vmem:[%s1741_s3 + $0x58] sm:$0xff]  ;;  %v419_v22 = vld [vmem:[%s1741_s3 + $0x50] sm:$0xff]  ;;  %v1581_v5 = vshrl.u32 %v621_v4, 7 }
  0x1c   : > { %1030 = vmatprep.subr.mxu1 %v470_v9  ;;  %v453_v15 = vld [vmem:[%s1741_s3 + $0x160] sm:$0xff]  ;;  %996 = vmatpush3.msra.mxu0 %v422_v10  ;;  %v452_v19 = vld [vmem:[%s1741_s3 + $0x158] sm:$0xff]  ;;  %v451_v23 = vld [vmem:[%s1741_s3 + $0x150] sm:$0xff] }
  0x1d   : > { %1031 = vmatpush3.msra.mxu1 %v454_v11  ;;  %997 = vmatprep.subr.mxu0 %v437_v12  ;;  %v434_v24 = vld [vmem:[%s1741_s3 + $0xc8] sm:$0xff]  ;;  %v433_v28 = vld [vmem:[%s1741_s3 + $0xc0] sm:$0xff]  ;;  %v432_v32 = vld [vmem:[%s1741_s3 + $0xb8] sm:$0xff]  ;;  %v623_v8 = vsub.s32 2, %v1581_v5 }
  0x1e   : > { %1032 = vmatprep.subr.mxu1 %v469_v13  ;;  %998 = vmatpush3.msra.mxu0 %v421_v14  ;;  %v466_v25 = vld [vmem:[%s1741_s3 + $0x1c8] sm:$0xff]  ;;  %v465_v29 = vld [vmem:[%s1741_s3 + $0x1c0] sm:$0xff]  ;;  %v464_v33 = vld [vmem:[%s1741_s3 + $0x1b8] sm:$0xff] }
  0x1f   : > { %1033 = vmatpush3.msra.mxu1 %v453_v15  ;;  %999 = vmatprep.subr.mxu0 %v436_v16  ;;  %v418_v26 = vld [vmem:[%s1741_s3 + $0x48] sm:$0xff]  ;;  %v417_v30 = vld [vmem:[%s1741_s3 + $0x40] sm:$0xff]  ;;  %v416_v34 = vld [vmem:[%s1741_s3 + $0x38] sm:$0xff] }
  0x20   : > { %1034 = vmatprep.subr.mxu1 %v468_v17  ;;  %1000 = vmatpush3.msra.mxu0 %v420_v18  ;;  %v450_v27 = vld [vmem:[%s1741_s3 + $0x148] sm:$0xff]  ;;  %v449_v31 = vld [vmem:[%s1741_s3 + $0x140] sm:$0xff]  ;;  %v448_v35 = vld [vmem:[%s1741_s3 + $0x138] sm:$0xff] }
  0x21   : > { %1035 = vmatpush3.msra.mxu1 %v452_v19  ;;  %1001 = vmatprep.subr.mxu0 %v435_v20  ;;  %v431_v36 = vld [vmem:[%s1741_s3 + $0xb0] sm:$0xff]  ;;  %v430_v40 = vld [vmem:[%s1741_s3 + $0xa8] sm:$0xff]  ;;  %v429_v44 = vld [vmem:[%s1741_s3 + $0xa0] sm:$0xff] }
  0x22   : > { %1036 = vmatprep.subr.mxu1 %v467_v21  ;;  %1002 = vmatpush3.msra.mxu0 %v419_v22  ;;  %v463_v37 = vld [vmem:[%s1741_s3 + $0x1b0] sm:$0xff]  ;;  %v462_v41 = vld [vmem:[%s1741_s3 + $0x1a8] sm:$0xff]  ;;  %v461_v45 = vld [vmem:[%s1741_s3 + $0x1a0] sm:$0xff] }
  0x23   : > { %1037 = vmatpush3.msra.mxu1 %v451_v23  ;;  %1003 = vmatprep.subr.mxu0 %v434_v24  ;;  %v415_v38 = vld [vmem:[%s1741_s3 + $0x30] sm:$0xff]  ;;  %v414_v42 = vld [vmem:[%s1741_s3 + $0x28] sm:$0xff]  ;;  %v413_v46 = vld [vmem:[%s1741_s3 + $0x20] sm:$0xff] }
  0x24   : > { %1038 = vmatprep.subr.mxu1 %v466_v25  ;;  %1004 = vmatpush3.msra.mxu0 %v418_v26  ;;  %v447_v39 = vld [vmem:[%s1741_s3 + $0x130] sm:$0xff]  ;;  %v446_v43 = vld [vmem:[%s1741_s3 + $0x128] sm:$0xff]  ;;  %v445_v47 = vld [vmem:[%s1741_s3 + $0x120] sm:$0xff] }
  0x25   : > { %1039 = vmatpush3.msra.mxu1 %v450_v27  ;;  %1005 = vmatprep.subr.mxu0 %v433_v28  ;;  %v428_v48 = vld [vmem:[%s1741_s3 + $0x98] sm:$0xff]  ;;  %v427_v52 = vld [vmem:[%s1741_s3 + $0x90] sm:$0xff]  ;;  %v426_v56 = vld [vmem:[%s1741_s3 + $0x88] sm:$0xff]  ;;  %v1270_v28 = vmov 0.0  }
  0x26   : > { %1040 = vmatprep.subr.mxu1 %v465_v29  ;;  %1006 = vmatpush3.msra.mxu0 %v417_v30  ;;  %v460_v49 = vld [vmem:[%s1741_s3 + $0x198] sm:$0xff]  ;;  %v459_v53 = vld [vmem:[%s1741_s3 + $0x190] sm:$0xff]  ;;  %v458_v57 = vld [vmem:[%s1741_s3 + $0x188] sm:$0xff] }
  0x27   : > { %1041 = vmatpush3.msra.mxu1 %v449_v31  ;;  %1007 = vmatprep.subr.mxu0 %v432_v32  ;;  %v412_v50 = vld [vmem:[%s1741_s3 + $0x18] sm:$0xff]  ;;  %v411_v54 = vld [vmem:[%s1741_s3 + $0x10] sm:$0xff]  ;;  %v410_v58 = vld [vmem:[%s1741_s3 + $0x8] sm:$0xff] }
  0x28   : > { %1042 = vmatprep.subr.mxu1 %v464_v33  ;;  %1008 = vmatpush3.msra.mxu0 %v416_v34  ;;  %v444_v51 = vld [vmem:[%s1741_s3 + $0x118] sm:$0xff]  ;;  %v443_v55 = vld [vmem:[%s1741_s3 + $0x110] sm:$0xff]  ;;  %v442_v59 = vld [vmem:[%s1741_s3 + $0x108] sm:$0xff] }
  0x29   : > { %1043 = vmatpush3.msra.mxu1 %v448_v35  ;;  %1009 = vmatprep.subr.mxu0 %v431_v36  ;;  %v425_v60 = vld [vmem:[%s1741_s3 + $0x80] sm:$0xff]  ;;  %v406_v63 = vld [vmem:[%s392_s13 + $0x8] sm:$0xff]  ;;  %v408_v1 = vld [vmem:[%s392_s13 + $0x18] sm:$0xff] }
  0x2a   : > { %1044 = vmatprep.subr.mxu1 %v463_v37  ;;  %1010 = vmatpush3.msra.mxu0 %v415_v38  ;;  %v457_v61 = vld [vmem:[%s1741_s3 + $0x180] sm:$0xff]  ;;  %v407_v3 = vld [vmem:[%s392_s13 + $0x10] sm:$0xff]  ;;  %v663_v27 = vld [vmem:[%s1743_s5 + $0x18] sm:$0xff] }
  0x2b   : > { %1045 = vmatpush3.msra.mxu1 %v447_v39  ;;  %1011 = vmatprep.subr.mxu0 %v430_v40  ;;  %v409_v62 = vld [vmem:[%s1741_s3] sm:$0xff]  ;;  %v662_v29 = vld [vmem:[%s1743_s5 + $0x10] sm:$0xff]  ;;  %v661_v30 = vld [vmem:[%s1743_s5 + $0x8] sm:$0xff] }
  0x2c   : > { %1046 = vmatprep.subr.mxu1 %v462_v41  ;;  %1012 = vmatpush3.msra.mxu0 %v414_v42  ;;  %v441_v0 = vld [vmem:[%s1741_s3 + $0x100] sm:$0xff]  ;;  %v652_v41 = vsub.s32 4, %v1581_v5  ;;  %v657_v42 = vsub.s32 3, %v1581_v5 }
  0x2d   : > { %1047 = vmatpush3.msra.mxu1 %v446_v43  ;;  %1013 = vmatprep.subr.mxu0 %v429_v44  ;;  %v405_v2 = vld [vmem:[%s392_s13] sm:$0xff]  ;;  %s383_s13 = scalar_lea.vmem [#allocation2], %s977_s26 }
  0x2e   : > { %1048 = vmatprep.subr.mxu1 %v461_v45  ;;  %1014 = vmatpush3.msra.mxu0 %v413_v46  ;;  %v1587_v9 = vld [vmem:[%s403_s17] sm:$0x3f]  ;;  %s987_s17 = sshll.u32 %s1260_s12, 7  ;;  %s868_s29 = sshll.u32 %s383_s13, 4  ;;  %s869_s29 = int_to_ptr.vmem [resolvable:$true] %s868_s29 }
  0x2f   : > { %1049 = vmatpush3.msra.mxu1 %v445_v47  ;;  %1015 = vmatprep.subr.mxu0 %v428_v48  ;;  %v982_v10 = vld [vmem:[%s1742_s4] ss:$0 sm:$0xff]  ;;  %v624_v16 = vrot.slane %v1587_v9, %v623_v8  ;;  %v649_v40 = vadd.f32 1.0, %v1587_v9  ;;  %v658_v45 = vrot.slane %v1587_v9, %v657_v42  ;;  %s1192_s20 = scalar_lea.vmem %s869_s29, 128  ;;  %s1196_s12 = sshll.u32 %s1272_s24, 4  ;;  %s1197_s12 = int_to_ptr.vmem [resolvable:$false] %s1196_s12 }
  0x30   : > { %1050 = vmatprep.subr.mxu1 %v460_v49  ;;  %1016 = vmatpush3.msra.mxu0 %v412_v50  ;;  %v620_v18 = vld [vmem:[%s399_s18] sm:$0xff]  ;;  %v768_v49 = vld [vmem:[%s1745_s7 + $0x78] sm:$0xff]  ;;  %v767_v50 = vld [vmem:[%s1745_s7 + $0x70] sm:$0xff]  ;;  %s866_s18 = scalar_lea.hbm %s1747_s9, %s987_s17  ;;  %p1193_p12 = scmp.ne.s32.totalorder %s869_s29, %s1192_s20 }
  0x31   : > { %1051 = vmatpush3.msra.mxu1 %v444_v51  ;;  %1017 = vmatprep.subr.mxu0 %v427_v52  ;;  %v660_v31 = vld [vmem:[%s1743_s5] sm:$0xff]  ;;  %v653_v43 = vrot.slane %v649_v40, %v652_v41  ;;  %v766_v51 = vld [vmem:[%s1745_s7 + $0x68] sm:$0xff]  ;;  %s1198_s26 = scalar_lea.vmem %s1197_s12, 256  ;;  %p1199_p1 = scmp.lt.s32.totalorder %s869_s29, %s1197_s12 }
  0x32   : > { %1052 = vmatprep.subr.mxu1 %v459_v53  ;;  %1018 = vmatpush3.msra.mxu0 %v411_v54  ;;  %v765_v52 = vld [vmem:[%s1745_s7 + $0x60] sm:$0xff]  ;;  %v764_v53 = vld [vmem:[%s1745_s7 + $0x58] sm:$0xff]  ;;  %v763_v54 = vld [vmem:[%s1745_s7 + $0x50] sm:$0xff]  ;;  %p1194_p13 = pnand %p1193_p12, %p1363_p4  ;;  %p1200_p2 = scmp.lt.s32.totalorder %s1198_s26, %s1192_s20 }
  0x33   : > { %1053 = vmatpush3.msra.mxu1 %v443_v55  ;;  %1019 = vmatprep.subr.mxu0 %v426_v56  ;;  %v762_v55 = vld [vmem:[%s1745_s7 + $0x48] sm:$0xff]  ;;  %v761_v56 = vld [vmem:[%s1745_s7 + $0x40] sm:$0xff] }
  0x34   : > { %1054 = vmatprep.subr.mxu1 %v458_v57  ;;  %1020 = vmatpush3.msra.mxu0 %v410_v58  ;;  %v760_v57 = vld [vmem:[%s1745_s7 + $0x38] sm:$0xff]  ;;  %v759_v58 = vld [vmem:[%s1745_s7 + $0x30] sm:$0xff]  ;;  %p1195_p0 = pneg %p1194_p13  ;;  %p1201_p3 = por %p1200_p2, %p1199_p1 }
  0x35   : > { %1055 = vmatpush3.msra.mxu1 %v442_v59  ;;  %1021 = vmatprep.subr.mxu0 %v425_v60  ;;  %v758_v59 = vld [vmem:[%s1745_s7 + $0x28] sm:$0xff]  ;;  %v757_v60 = vld [vmem:[%s1745_s7 + $0x20] sm:$0xff] }
  0x36   : > { %1056 = vmatprep.subr.mxu1 %v457_v61  ;;  %1022 = vmatpush3.msra.mxu0 %v409_v62  ;;  %v756_v61 = vld [vmem:[%s1745_s7 + $0x18] sm:$0xff]  ;;  %v755_v62 = vld [vmem:[%s1745_s7 + $0x10] sm:$0xff]  ;;  %p1202_p5 = pnand %p1201_p3, %p1195_p0 }
  0x37   : > { %544 = vmatprep.mubr.f32.mxu0 %v406_v63  ;;  %1057 = vmatpush3.msra.mxu1 %v441_v0  ;;  %v754_v63 = vld [vmem:[%s1745_s7 + $0x8] sm:$0xff]  ;;  %v753_v0 = vld [vmem:[%s1745_s7] sm:$0xff] }
  0x38   : > { %614 = vmatprep.mubr.f32.mxu1 %v408_v1  ;;  %545 = vmatmul.mubr.f32.vlgmr.msra.gmra.mxu0 %v405_v2  ;;  %v983_v1 = vld [vmem:[%s1744_s6] ss:$0 sm:$0xff] }
  0x39   : > { %615 = vmatmul.mubr.f32.vlgmr.msra.gmra.mxu1 %v407_v3  ;;  %1083 = vmatprep.subr.mxu0 %v1270_v28 }
  0x3a   : > { %1091 = vmatprep.mubr.msk.f32.mxu0 %vm1271_vm1, %v1270_v28  ;;  %1084 = vmatpush3.msra.mxu0 %v663_v27 }
  0x3b   : > { %1094 = vmatprep.subr.mxu1 %v1270_v28  ;;  %1085 = vmatprep.subr.mxu0 %v1270_v28 }
  0x3c   : > { %1126 = vmatprep.mubr.msk.f32.mxu1 %vm1271_vm1, %v1270_v28  ;;  %1086 = vmatpush3.msra.mxu0 %v662_v29 }
  0x3d   : > { %1087 = vmatprep.subr.mxu0 %v1270_v28  ;;  %1095 = vmatpush3.msra.mxu1 %v768_v49 }
  0x3e   : > { %1088 = vmatpush3.msra.mxu0 %v661_v30  ;;  %1096 = vmatprep.subr.mxu1 %v1270_v28 }
  0x3f   : > { %1089 = vmatprep.subr.mxu0 %v1270_v28  ;;  %1097 = vmatpush3.msra.mxu1 %v767_v50 }
  0x40   : > { %1090 = vmatpush3.msra.mxu0 %v660_v31  ;;  %1098 = vmatprep.subr.mxu1 %v1270_v28 }
  0x41   : > { %1099 = vmatpush3.msra.mxu1 %v766_v51 }
  0x42   : > { %1100 = vmatprep.subr.mxu1 %v1270_v28 }
  0x43   : > { %1101 = vmatpush3.msra.mxu1 %v765_v52 }
  0x44   : > { %1102 = vmatprep.subr.mxu1 %v1270_v28 }
  0x45   : > { %1103 = vmatpush3.msra.mxu1 %v764_v53 }
  0x46   : > { %1104 = vmatprep.subr.mxu1 %v1270_v28 }
  0x47   : > { %1105 = vmatpush3.msra.mxu1 %v763_v54 }
  0x48   : > { %1106 = vmatprep.subr.mxu1 %v1270_v28 }
  0x49   : > { %1107 = vmatpush3.msra.mxu1 %v762_v55 }
  0x4a   : > { %1108 = vmatprep.subr.mxu1 %v1270_v28 }
  0x4b   : > { %1109 = vmatpush3.msra.mxu1 %v761_v56 }
  0x4c   : > { %1110 = vmatprep.subr.mxu1 %v1270_v28 }
  0x4d   : > { %1111 = vmatpush3.msra.mxu1 %v760_v57 }
  0x4e   : > { %1112 = vmatprep.subr.mxu1 %v1270_v28 }
  0x4f   : > { %1113 = vmatpush3.msra.mxu1 %v759_v58 }
  0x50   : > { %1114 = vmatprep.subr.mxu1 %v1270_v28 }
  0x51   : > { %1115 = vmatpush3.msra.mxu1 %v758_v59 }
  0x52   : > { %1116 = vmatprep.subr.mxu1 %v1270_v28 }
  0x53   : > { %1117 = vmatpush3.msra.mxu1 %v757_v60 }
  0x54   : > { %1118 = vmatprep.subr.mxu1 %v1270_v28 }
  0x55   : > { %1119 = vmatpush3.msra.mxu1 %v756_v61 }
  0x56   : > { %1120 = vmatprep.subr.mxu1 %v1270_v28 }
  0x57   : > { %1121 = vmatpush3.msra.mxu1 %v755_v62 }
  0x58   : > { %1122 = vmatprep.subr.mxu1 %v1270_v28 }
  0x59   : > { %1123 = vmatpush3.msra.mxu1 %v754_v63 }
  0x5a   : > { %1124 = vmatprep.subr.mxu1 %v1270_v28 }
  0x5b   : > { %1125 = vmatpush3.msra.mxu1 %v753_v0 }
  0xf8   : > { %v1023_v6 = vpop.f32.mrf.mxu0 }
  0xf9   : > { %v1058_v7 = vpop.f32.mrf.mxu1 }
  0xfa   : > { %v1024_v11 = vpop.f32.mrf.mxu0 }
  0xfb   : > { %v1059_v12 = vpop.f32.mrf.mxu1  ;;  %v1025_v13 = vadd.f32 %v1024_v11, %v1023_v6 }
  0xfc   : > { %v1060_v15 = vadd.f32 %v1059_v12, %v1058_v7 }
  0xfd   : > { %v547_v14 = vadd.f32 %v1025_v13, %v982_v10 }
  0xff   : > { %v617_v17 = vadd.f32 %v1060_v15, %v547_v14 }
 0x101   : > { %v625_v19 = vmul.f32 %v624_v16, %v617_v17  ;;  %v848_v16 = vsub.s32 5, %v1581_v5  ;;  %v985_v17 = vld [vmem:[%s1746_s8] ss:$0 sm:$0xff] }
 0x103   : > { %v1596_v20 = vadd.f32 %v625_v19, %v620_v18  ;;  %v849_v18 = vrot.slane %v1587_v9, %v848_v16 }
 0x105   : > { %v628_v21 = vsel %vm627_vm0, %v1596_v20, 0.0 }
 0x106   : > { %629 = vadd.xlane.f32.xlu0 %v628_v21 }
 0x18f   : > { %v630_v22 = vpop.xlane.xlu0 %629 }
 0x190   : > { %v632_v23 = vmul.f32 0.03125, %v630_v22 }
 0x192   : > { %v633_v24 = vsub.f32 %v1596_v20, %v632_v23 }
 0x194   : > { %v634_v25 = vmul.f32 %v633_v24, %v633_v24 }
 0x196   : > { %v635_v26 = vsel %vm627_vm0, %v634_v25, 0.0 }
 0x197   : > { %636 = vadd.xlane.f32.xlu0 %v635_v26 }
 0x220   : > { %v637_v32 = vpop.xlane.xlu0 %636 }
 0x221   : > { %v638_v33 = vmul.f32 0.03125, %v637_v32 }
 0x223   : > { %v639_v34 = vadd.f32 1e-06, %v638_v33 }
 0x225   : > { %1186 = vrsqrt.f32 %v639_v34  ;;  %vm642_vm2 = vcmp.eq.f32.partialorder %v639_v34, inf  ;;  %v645_v37 = vand.u32 2147483648, %v639_v34  ;;  %vm644_vm3 = vcmp.eq.f32.partialorder %v639_v34, 0.0 }
 0x232   : > { %v1187_v35 = vpop.eup %1186 }
 0x233   : > { %v641_v36 = vmul.f32 %v1187_v35, %v639_v34 }
 0x235   : > { %v643_v38 = vsel %vm642_vm2, %v639_v34, %v641_v36 }
 0x236   : > { %v646_v39 = vsel %vm644_vm3, %v645_v37, %v643_v38 }
 0x237   : > { %1188 = vrcp.f32 %v646_v39 }
 0x244   : > { %v1189_v44 = vpop.eup %1188 }
 0x245   : > { %v648_v46 = vmul.f32 %v1189_v44, %v633_v24 }
 0x247   : > { %v654_v47 = vmul.f32 %v653_v43, %v648_v46 }
 0x249   : > { %v659_v48 = vadd.f32 %v658_v45, %v654_v47 }
 0x24b   : > { %1092 = vmatmul.mubr.msk.f32.vlgmr.msra.gmra.mxu0 %vm627_vm0, %v659_v48 }
 0x30b   : > { %v740_v2 = vpop.f32.mrf.mxu0 }
 0x30c   : > { %v741_v3 = vadd.f32 %v983_v1, %v740_v2 }
 0x30d   : > { %v1093_v4 = vpop.f32.mrf.mxu0 }
 0x30e   : > { %v745_v6 = vmul.f32 0.044715, %v741_v3  ;;  %v744_v13 = vmul.f32 0.5, %v741_v3 }
 0x310   : > { %v746_v7 = vmul.f32 %v745_v6, %v741_v3 }
 0x312   : > { %v747_v8 = vmul.f32 %v746_v7, %v741_v3 }
 0x314   : > { %v748_v10 = vadd.f32 %v747_v8, %v741_v3 }
 0x316   : > { %v749_v11 = vmul.f32 0.7978846, %v748_v10 }
 0x318   : > { %1190 = vtanh.f32 %v749_v11 }
 0x325   : > { %v1191_v12 = vpop.eup %1190 }
 0x326   : > { %v751_v14 = vadd.f32 1.0, %v1191_v12 }
 0x328   : > { %v752_v15 = vmul.f32 %v751_v14, %v744_v13 }
 0x32a   : > { %1127 = vmatmul.mubr.f32.vlgmr.msra.gmra.mxu1 %v752_v15 }
 0x3ea   : > { %v842_v19 = vpop.f32.mrf.mxu1 }
 0x3eb   : > { %v843_v21 = vadd.f32 %v985_v17, %v842_v19 }
 0x3ec   : > { %v1128_v22 = vpop.f32.mrf.mxu1 }
 0x3ed   : > { %v850_v23 = vmul.f32 %v849_v18, %v843_v21 }
 0x3ef   : > { %v851_v24 = vadd.f32 %v850_v23, %v1596_v20 }
 0x3f1   : > { %852 = vst.msk [vmem:[%s383_s13] sm:$0xff] %vm627_vm0, %v851_v24 }
 0x3f2   : > { %1205 = shalt.err (!%p1202_p5)
}
 0x3f3   : > { %s1206_s27 = scalar_lea.hbm %s866_s18, 128  ;;  %s1210_s17 = scalar_lea.hbm %s1747_s9, 256 }
 0x3f4   : > { %p1207_p6 = scmp.ne.s32.totalorder %s866_s18, %s1206_s27  ;;  %p1211_p10 = scmp.lt.s32.totalorder %s866_s18, %s1747_s9 }
 0x3f5   : > { %p1212_p11 = scmp.lt.s32.totalorder %s1210_s17, %s1206_s27 }
 0x3f6   : > { %p1208_p7 = pnand %p1207_p6, %p1363_p4 }
 0x3f7   : > { %p1213_p12 = por %p1212_p11, %p1211_p10 }
 0x3f8   : > { %p1209_p9 = pneg %p1208_p7 }
 0x3fa   : > { %p1214_p13 = pnand %p1213_p12, %p1209_p9 }
 0x3fc   : > { %1217 = shalt.err (!%p1214_p13)
}
 0x3fd   : > { %1129 = dma.vmem_to_hbm [thread:$0]  (%p1363_p4), %s869_s29, 128, %s866_s18, %s854_s15  }
 0x3fe PF: > { %p1135_p0 = scmp.ge.s32.totalorder %s1268_s14, 2  ;;  %s880_s16 = sand.u32 1, %s1248_s30  }
 0x3ff   : > { %s881_s20 = scalar_lea.sflag [#allocation3], %s880_s16 }
 0x400   : > { %p1132_p1 = pnand %p1135_p0, %p1370_p8 }
 0x402   : > { %p1133_p2 = pneg %p1132_p1 }
 0x404   : > { %1243 = dma.done.wait (%p1133_p2), %s881_s20, 128  }
 0x405   : > { %1245 = vsyncadd (%p1133_p2), %s881_s20, 4294967168  ;;  %s22_s14 = sadd.s32 1, %s1268_s14   ;;  %s1754_s12 = sld [smem:[#allocation5_spill]] }
 0x406   : > { %p19_p3 = scmp.ge.s32.totalorder %s22_s14, 4   ;;  %s1755_s13 = sld [smem:[#allocation6_spill]] }
 0x407   : > { %s1756_s30 = smov %s1252_s10  ;;  %s1757_s10 = smov %s1256_s11 }
 0x408   : > { %s1758_s11 = smov %s1376_s22  ;;  %21 = sbr.rel (!%p19_p3) target bundleno = 4 (0x4), region = 97 }
 0x40d   :  { %886 = vsyncpa [#allocation3], 1 }
 0x40e   :  { %888 = vsyncpa [#allocation3 + $0x1], 1 }

</bundles_post_ra>
